<compile_context>
chip_gen: v7x
topology: tpu7x:2x2x1
jax: 0.10.0
libtpu: 0.0.40
codegen_flags: <defaults>
</compile_context>

<pallas_src>
import jax
import jax.numpy as jnp
from jax.experimental import pallas as pl
from jax.experimental.pallas import tpu as pltpu

_EPS = 1e-12  # matches F.normalize eps semantics (clamp of the norm)


def _cttp_contrast_kernel(nstep_ref, gold_ref, embs_ref, margs_ref, out_ref):
    """One (B-tile, K-tile) step of the expected contrastive loss."""
    kb = pl.program_id(1)
    tb, tk, S = margs_ref.shape

    # Accumulator lives in the resident output block across the K axis.
    @pl.when(kb == 0)
    def _init():
        out_ref[...] = jnp.zeros_like(out_ref)

    gold = gold_ref[...].astype(jnp.float32)        # (tb, D)
    margs = margs_ref[...].astype(jnp.float32)      # (tb, tk, S)

    # gold_head(gold_embs, normalized=True): L2-normalize gold (rsqrt -> EUP).
    g_ss = jnp.sum(gold * gold, axis=-1, keepdims=True)
    gold_n = gold * jax.lax.rsqrt(jnp.maximum(g_ss, _EPS * _EPS))

    # softmax over NT states for every step in the K tile at once.
    m = jnp.max(margs, axis=-1, keepdims=True)
    e = jnp.exp(margs - m)
    p = e / jnp.sum(e, axis=-1, keepdims=True)      # (tb, tk, S)

    # Marginal-weighted mix over states. Multiply in the storage dtype of embs
    # (f32 here, bf16 supported) and accumulate over S in f32 -- no separate
    # full-block f32 upcast copy is materialized.
    embs = embs_ref[...]                            # (tb, tk, S, D)
    prod = p.astype(embs.dtype)[..., None] * embs
    span_vect = jnp.sum(prod, axis=2, dtype=jnp.float32)   # (tb, tk, D)

    # F.normalize over the embedding dim (rsqrt -> EUP).
    v_ss = jnp.sum(span_vect * span_vect, axis=-1, keepdims=True)
    span_n = span_vect * jax.lax.rsqrt(jnp.maximum(v_ss, _EPS * _EPS))

    # TODO(synk): loss_head is defined outside this module; per-example cosine
    # distance (1 - <gold, span>) on normalized inputs is used as the loss.
    sim = jnp.sum(gold_n[:, None, :] * span_n, axis=-1)     # (tb, tk)
    loss = 1.0 - sim

    # expected_loss contribution: span_margs.sum(-1) * loss, masked for
    # k >= nstep (and for the K padding added by the wrapper).
    w = jnp.sum(margs, axis=-1)                              # (tb, tk)
    k_idx = kb * tk + jax.lax.broadcasted_iota(jnp.int32, (1, tk), 1)
    w = jnp.where(k_idx < nstep_ref[0], w, 0.0)

    out_ref[...] += jnp.sum(w * loss, axis=-1, keepdims=True)   # (tb, 1)


def cttp_contrastive_loss(gold_embs, span_embs, span_margs, lengths,
                          *, block_b=8, block_k=8):
    """Pallas wrapper mirroring CTTP.contrastive_loss (jit-safe, no host sync).

    gold_embs  : (B, D)            already projected to the shared space
    span_embs  : (B, Kfull, S, D)
    span_margs : (B, Kfull, S)
    lengths    : (B,) int32
    returns    : (B,) expected contrastive loss
    """
    B, D = gold_embs.shape
    _, K_full, S, D2 = span_embs.shape
    assert D == D2

    # nstep = int(mean(len*(len-1)/2) / 2), computed on device and consumed via
    # scalar prefetch -> one compiled kernel for every nstep, no host round-trip.
    mstep = (lengths * (lengths - 1)) // 2
    nstep = (jnp.mean(mstep.astype(jnp.float32)) / 2.0).astype(jnp.int32).reshape(1)

    tb = block_b if (B % block_b == 0) else B
    tk = block_k

    # Pad K to a tile multiple (zero pads contribute zero weight and are also
    # masked by the nstep test inside the kernel).
    pad_k = (-K_full) % tk
    if pad_k:
        span_embs = jnp.pad(span_embs, ((0, 0), (0, pad_k), (0, 0), (0, 0)))
        span_margs = jnp.pad(span_margs, ((0, 0), (0, pad_k), (0, 0)))
    Kp = K_full + pad_k

    grid = (B // tb, Kp // tk)   # B tiles (parallel), K tiles (reduction, last)

    out = pl.pallas_call(
        _cttp_contrast_kernel,
        out_shape=jax.ShapeDtypeStruct((B, 1), jnp.float32),
        grid_spec=pltpu.PrefetchScalarGridSpec(
            num_scalar_prefetch=1,          # nstep -> SMEM
            grid=grid,
            in_specs=[
                pl.BlockSpec((tb, D), lambda b, k, n: (b, 0)),
                pl.BlockSpec((tb, tk, S, D), lambda b, k, n: (b, k, 0, 0)),
                pl.BlockSpec((tb, tk, S), lambda b, k, n: (b, k, 0)),
            ],
            out_specs=pl.BlockSpec((tb, 1), lambda b, k, n: (b, 0)),
        ),
        compiler_params=pltpu.CompilerParams(
            dimension_semantics=("parallel", "arbitrary"),
            # Explicit VMEM budget: safe on every generation (v7x has 64 MiB
            # physical); raise when sweeping tk upward on 128 MiB parts.
            vmem_limit_bytes=32 * 1024 * 1024,
        ),
    )(nstep, gold_embs, span_embs, span_margs)
    return out[:, 0]


def _reference(gold_embs, span_embs, span_margs, lengths):
    """Pure-JAX reference reproducing the PyTorch k-loop semantics."""
    ls = [int(v) for v in lengths.tolist()]
    mstep = [l * (l - 1) // 2 for l in ls]
    nstep = int((sum(mstep) / len(mstep)) / 2)

    gold_n = gold_embs / jnp.maximum(
        jnp.linalg.norm(gold_embs, axis=-1, keepdims=True), _EPS)
    losses = []
    for k in range(nstep):
        p = jax.nn.softmax(span_margs[:, k], axis=-1)                # (B, S)
        v = jnp.sum(p[:, :, None] * span_embs[:, k], axis=1)         # (B, D)
        v = v / jnp.maximum(jnp.linalg.norm(v, axis=-1, keepdims=True), _EPS)
        losses.append(1.0 - jnp.sum(gold_n * v, axis=-1))
    mat = jnp.stack(losses, axis=1)                                   # (B, nstep)
    w = span_margs.sum(-1)[:, :nstep]
    return jnp.sum(w * mat, axis=-1)


if __name__ == "__main__":
    key = jax.random.PRNGKey(0)
    # Lane/sublane-dense small shapes: trailing (S, D) = (8, 128) = one f32 tile.
    B, N, S, D, D_gold = 16, 8, 8, 128, 64
    K_full = N * (N - 1) // 2  # 28 span steps for the longest sentence

    k1, k2, k3, k4 = jax.random.split(key, 4)
    lengths = jnp.array([8, 7, 6, 8, 5, 8, 7, 6, 8, 7, 5, 8, 6, 7, 8, 4],
                        dtype=jnp.int32)

    # Synthetic gold embeddings + deterministic gold_head linear projection.
    gold_raw = jax.random.normal(k1, (B, D_gold), dtype=jnp.float32)
    w_gold = jax.random.normal(k2, (D_gold, D), dtype=jnp.float32) / jnp.sqrt(D_gold)
    gold_embs = gold_raw @ w_gold                                    # (B, D)

    # Synthetic text_head span embeddings and PCFG span marginals (>= 0).
    span_embs = jax.random.normal(k3, (B, K_full, S, D), dtype=jnp.float32)
    span_margs = 0.1 * jax.nn.softplus(
        jax.random.normal(k4, (B, K_full, S), dtype=jnp.float32))

    fn = jax.jit(cttp_contrastive_loss)
    out = fn(gold_embs, span_embs, span_margs, lengths)
    jax.block_until_ready(out)

    ref = _reference(gold_embs, span_embs, span_margs, lengths)
    assert out.shape == (B,)
    assert jnp.allclose(out, ref, atol=1e-4, rtol=1e-4), (out, ref)

    print("KERNEL_OK")
</pallas_src>

<mosaic_0001>
module attributes {stable_mosaic.version = 11 : i64} {
  func.func @_cttp_contrast_kernel(%arg0: i32, %arg1: i32, %arg2: memref<1xi32, #tpu.memory_space<smem>>, %arg3: memref<8x128xf32, #tpu.memory_space<vmem>>, %arg4: memref<8x8x8x128xf32, #tpu.memory_space<vmem>>, %arg5: memref<8x8x8xf32, #tpu.memory_space<vmem>>, %arg6: memref<8x1xf32, #tpu.memory_space<vmem>>) attributes {dimension_semantics = [#tpu.dimension_semantics<parallel>, #tpu.dimension_semantics<arbitrary>], iteration_bounds = array<i64: 2, 4>, scalar_prefetch = 1 : i64, scratch_operands = 0 : i64, tpu.core_type = #tpu.core_type<tc>, window_params = [{transform_indices = @transform_0, window_bounds = array<i64: 8, 128>}, {transform_indices = @transform_1, window_bounds = array<i64: 8, 8, 8, 128>}, {transform_indices = @transform_2, window_bounds = array<i64: 8, 8, 8>}, {transform_indices = @transform_3, window_bounds = array<i64: 8, 1>}]} {
    %c0_i32 = arith.constant 0 : i32
    %0 = arith.cmpi eq, %arg1, %c0_i32 : i32
    %1 = arith.extui %0 : i1 to i32
    %c0_i32_0 = arith.constant 0 : i32
    %2 = arith.cmpi ne, %1, %c0_i32_0 : i32
    scf.if %2 {
      %cst_25 = arith.constant 0.000000e+00 : f32
      %59 = vector.broadcast %cst_25 : f32 to vector<8x1xf32>
      %c0_26 = arith.constant 0 : index
      %c0_27 = arith.constant 0 : index
      %60 = vector.load %arg6[%c0_26, %c0_27] : memref<8x1xf32, #tpu.memory_space<vmem>>, vector<8x1xf32>
      tpu.vector_store %arg6[%c0_26, %c0_27], %59 {strides = array<i32>} : memref<8x1xf32, #tpu.memory_space<vmem>>, vector<8x1xf32>,
    } else {
    }
    %c0 = arith.constant 0 : index
    %c0_1 = arith.constant 0 : index
    %3 = vector.load %arg3[%c0, %c0_1] : memref<8x128xf32, #tpu.memory_space<vmem>>, vector<8x128xf32>
    %c0_2 = arith.constant 0 : index
    %c0_3 = arith.constant 0 : index
    %c0_4 = arith.constant 0 : index
    %4 = vector.load %arg5[%c0_2, %c0_3, %c0_4] : memref<8x8x8xf32, #tpu.memory_space<vmem>>, vector<8x8x8xf32>
    %5 = arith.mulf %3, %3 : vector<8x128xf32>
    %cst = arith.constant dense<0.000000e+00> : vector<8xf32>
    %6 = vector.multi_reduction <add>, %5, %cst [1] : vector<8x128xf32> to vector<8xf32>
    %7 = vector.shape_cast %6 : vector<8xf32> to vector<8x1xf32>
    %cst_5 = arith.constant 1.000000e-24 : f32
    %8 = vector.broadcast %cst_5 : f32 to vector<8x1xf32>
    %9 = arith.maximumf %7, %8 : vector<8x1xf32>
    %10 = math.rsqrt %9 : vector<8x1xf32>
    %11 = vector.broadcast %10 : vector<8x1xf32> to vector<8x128xf32>
    %12 = arith.mulf %3, %11 : vector<8x128xf32>
    %cst_6 = arith.constant dense<0xFF800000> : vector<8x8xf32>
    %13 = vector.multi_reduction <maximumf>, %4, %cst_6 [2] : vector<8x8x8xf32> to vector<8x8xf32>
    %14 = vector.shape_cast %13 : vector<8x8xf32> to vector<8x8x1xf32>
    %15 = vector.broadcast %14 : vector<8x8x1xf32> to vector<8x8x8xf32>
    %16 = arith.subf %4, %15 : vector<8x8x8xf32>
    %17 = math.exp %16 : vector<8x8x8xf32>
    %cst_7 = arith.constant dense<0.000000e+00> : vector<8x8xf32>
    %18 = vector.multi_reduction <add>, %17, %cst_7 [2] : vector<8x8x8xf32> to vector<8x8xf32>
    %19 = vector.shape_cast %18 : vector<8x8xf32> to vector<8x8x1xf32>
    %20 = vector.broadcast %19 : vector<8x8x1xf32> to vector<8x8x8xf32>
    %21 = arith.divf %17, %20 : vector<8x8x8xf32>
    %c0_8 = arith.constant 0 : index
    %c0_9 = arith.constant 0 : index
    %c0_10 = arith.constant 0 : index
    %c0_11 = arith.constant 0 : index
    %22 = vector.load %arg4[%c0_8, %c0_9, %c0_10, %c0_11] : memref<8x8x8x128xf32, #tpu.memory_space<vmem>>, vector<8x8x8x128xf32>
    %23 = vector.shape_cast %21 : vector<8x8x8xf32> to vector<8x8x8x1xf32>
    %24 = vector.broadcast %23 : vector<8x8x8x1xf32> to vector<8x8x8x128xf32>
    %25 = arith.mulf %24, %22 : vector<8x8x8x128xf32>
    %cst_12 = arith.constant dense<0.000000e+00> : vector<8x8x128xf32>
    %26 = vector.multi_reduction <add>, %25, %cst_12 [2] : vector<8x8x8x128xf32> to vector<8x8x128xf32>
    %27 = arith.mulf %26, %26 : vector<8x8x128xf32>
    %cst_13 = arith.constant dense<0.000000e+00> : vector<8x8xf32>
    %28 = vector.multi_reduction <add>, %27, %cst_13 [2] : vector<8x8x128xf32> to vector<8x8xf32>
    %29 = vector.shape_cast %28 : vector<8x8xf32> to vector<8x8x1xf32>
    %cst_14 = arith.constant 1.000000e-24 : f32
    %30 = vector.broadcast %cst_14 : f32 to vector<8x8x1xf32>
    %31 = arith.maximumf %29, %30 : vector<8x8x1xf32>
    %32 = math.rsqrt %31 : vector<8x8x1xf32>
    %33 = vector.broadcast %32 : vector<8x8x1xf32> to vector<8x8x128xf32>
    %34 = arith.mulf %26, %33 : vector<8x8x128xf32>
    %35 = vector.shape_cast %12 : vector<8x128xf32> to vector<8x1x128xf32>
    %36 = vector.broadcast %35 : vector<8x1x128xf32> to vector<8x8x128xf32>
    %37 = arith.mulf %36, %34 : vector<8x8x128xf32>
    %cst_15 = arith.constant dense<0.000000e+00> : vector<8x8xf32>
    %38 = vector.multi_reduction <add>, %37, %cst_15 [2] : vector<8x8x128xf32> to vector<8x8xf32>
    %cst_16 = arith.constant 1.000000e+00 : f32
    %39 = vector.broadcast %cst_16 : f32 to vector<8x8xf32>
    %40 = arith.subf %39, %38 : vector<8x8xf32>
    %cst_17 = arith.constant dense<0.000000e+00> : vector<8x8xf32>
    %41 = vector.multi_reduction <add>, %4, %cst_17 [2] : vector<8x8x8xf32> to vector<8x8xf32>
    %c8_i32 = arith.constant 8 : i32
    %42 = arith.muli %arg1, %c8_i32 : i32
    %43 = tpu.iota {dimensions = array<i32: 1>} : vector<1x8xi32>
    %44 = vector.broadcast %42 : i32 to vector<1x8xi32>
    %45 = arith.addi %44, %43 : vector<1x8xi32>
    %c0_18 = arith.constant 0 : index
    %46 = memref.load %arg2[%c0_18] : memref<1xi32, #tpu.memory_space<smem>>
    %47 = vector.broadcast %46 : i32 to vector<1x8xi32>
    %48 = arith.cmpi slt, %45, %47 : vector<1x8xi32>
    %cst_19 = arith.constant 0.000000e+00 : f32
    %49 = vector.shape_cast %48 : vector<1x8xi1> to vector<1x8xi1>
    %50 = vector.broadcast %49 : vector<1x8xi1> to vector<8x8xi1>
    %51 = vector.broadcast %cst_19 : f32 to vector<8x8xf32>
    %52 = arith.select %50, %41, %51 : vector<8x8xi1>, vector<8x8xf32>
    %c0_20 = arith.constant 0 : index
    %c0_21 = arith.constant 0 : index
    %53 = vector.load %arg6[%c0_20, %c0_21] : memref<8x1xf32, #tpu.memory_space<vmem>>, vector<8x1xf32>
    %54 = arith.mulf %52, %40 : vector<8x8xf32>
    %cst_22 = arith.constant dense<0.000000e+00> : vector<8xf32>
    %55 = vector.multi_reduction <add>, %54, %cst_22 [1] : vector<8x8xf32> to vector<8xf32>
    %56 = vector.shape_cast %55 : vector<8xf32> to vector<8x1xf32>
    %57 = arith.addf %53, %56 : vector<8x1xf32>
    %c0_23 = arith.constant 0 : index
    %c0_24 = arith.constant 0 : index
    %58 = vector.load %arg6[%c0_23, %c0_24] : memref<8x1xf32, #tpu.memory_space<vmem>>, vector<8x1xf32>
    tpu.vector_store %arg6[%c0_23, %c0_24], %57 {strides = array<i32>} : memref<8x1xf32, #tpu.memory_space<vmem>>, vector<8x1xf32>,
    return
  }
  func.func @transform_0(%arg0: i32, %arg1: i32, %arg2: memref<1xi32, #tpu.memory_space<smem>>) -> (i32, i32) {
    %c0_i32 = arith.constant 0 : i32
    %c0_i32_0 = arith.constant 0 : i32
    return %arg0, %c0_i32 : i32, i32
  }
  func.func @transform_1(%arg0: i32, %arg1: i32, %arg2: memref<1xi32, #tpu.memory_space<smem>>) -> (i32, i32, i32, i32) {
    %c0_i32 = arith.constant 0 : i32
    %c0_i32_0 = arith.constant 0 : i32
    %c0_i32_1 = arith.constant 0 : i32
    return %arg0, %arg1, %c0_i32, %c0_i32_0 : i32, i32, i32, i32
  }
  func.func @transform_2(%arg0: i32, %arg1: i32, %arg2: memref<1xi32, #tpu.memory_space<smem>>) -> (i32, i32, i32) {
    %c0_i32 = arith.constant 0 : i32
    %c0_i32_0 = arith.constant 0 : i32
    return %arg0, %arg1, %c0_i32 : i32, i32, i32
  }
  func.func @transform_3(%arg0: i32, %arg1: i32, %arg2: memref<1xi32, #tpu.memory_space<smem>>) -> (i32, i32) {
    %c0_i32 = arith.constant 0 : i32
    %c0_i32_0 = arith.constant 0 : i32
    return %arg0, %c0_i32 : i32, i32
  }
}

</mosaic_0001>

<bundles_post_ra>
// kernel: cttp_contrastive_loss.1
= control target key start
LH: loop header
LB: loop body
LE: loop exit
PB: predicated region body
PF: predicated region fallthrough
CT: control target
= control target key end

     0   :  { %s4018_s0 = inlined_call_operand.<no memory space> [shape: s32[1], index: 0, kind: input, shape index: {}]   ;;  %s4019_s1 = inlined_call_operand.vmem [shape: f32[16,128], index: 1, kind: input, shape index: {}]   ;;  %s4020_s2 = inlined_call_operand.vmem [shape: f32[16,32,8,128], index: 2, kind: input, shape index: {}]   ;;  %s4021_s3 = inlined_call_operand.vmem [shape: f32[16,32,8], index: 3, kind: input, shape index: {}]   ;;  %s4022_s4 = inlined_call_operand.vmem [shape: f32[16,1], index: 4, kind: output, shape index: {}]  }
   0x1   :  { %9 = sst [smem:[#allocation3]] %s4018_s0 }
   0x2   :  { %s2852_s17 = smov 0   ;;  %s2854_s18 = smov 0  }
   0x3   :  { %s2856_s19 = smov 0   ;;  %s2858_s20 = smov 0  }
   0x4   :  { %s2860_s21 = smov 0   ;;  %s2862_s22 = smov 0  }
   0x5   :  { %s2864_s23 = smov 0  }
   0x6 LB: > { %s24_s0 = sadd.s32 1, %s2812_s21  ;;  %s27_s24 = sadd.s32 1, %s2816_s22  ;;  %s2820_s23 = sphi %s2864_s23, %s15_s23   ;;  %s2816_s22 = sphi %s2862_s22, %s4158_s22   ;;  %s2812_s21 = sphi %s2860_s21, %s4157_s21   ;;  %s2808_s20 = sphi %s2858_s20, %s4156_s20   ;;  %s2804_s19 = sphi %s2856_s19, %s4155_s19   ;;  %s2800_s18 = sphi %s2854_s18, %s4154_s18   ;;  %s2796_s17 = sphi %s2852_s17, %s4153_s17  }
   0x7   : > { %p25_p0 = scmp.ge.s32.totalorder %s24_s0, 4  ;;  %p69_p1 = scmp.ne.s32.totalorder %s2800_s18, %s2796_s17 }
   0x8   : > { %p70_p2 = scmp.eq.s32.totalorder %s2820_s23, 0  ;;  %s62_s29 = sadd.s32 1, %s2800_s18 }
   0x9   : > { %s4160_s0 = smov (%p25_p0, %s24_s0), 0  ;;  %s4162_s24 = smov (!%p25_p0, %s27_s24), %s2816_s22 }
   0xa   : > { %p2895_p3 = por %p70_p2, %p69_p1  ;;  %p29_p4 = scmp.ge.s32.totalorder %s4162_s24, 2 }
   0xb   : > { %s58_s26 = ssub.s32 %s2812_s21, %s4160_s0  ;;  %p2628_p6 = scmp.ge.s32.totalorder %s2820_s23, 8 }
   0xc   : > { %s4164_s24 = smov (%p29_p4, %s4162_s24), 0 }
   0xd   : > { %s57_s27 = ssub.s32 %s2816_s22, %s4164_s24  ;;  %149 = sbr.rel (%p2628_p6) target bundleno = 73 (0x49), region = 16 }
   0xe   : > { %s59_s28 = sor.u32 %s58_s26, %s57_s27 }
   0xf   : > { %p60_p5 = scmp.eq.s32.totalorder %s59_s28, 0 }
  0x11   : > { %s2907_s30 = scalar_select %p60_p5, %s2800_s18, %s62_s29  }
  0x14   : > { %159 = sbr.rel (!%p2895_p3) target bundleno = 59 (0x3b), region = 24  ;;  %s161_s5 = sand.u32 (%p2895_p3), 1, %s2800_s18  }
  0x15   : > { %s2631_s6 = sshll.u32 (%p2895_p3), %s2812_s21, 3  ;;  %s2629_s7 = sshll.u32 (%p2895_p3), %s161_s5, 9 }
  0x16   : > { %s2647_s8 = sshll.u32 (%p2895_p3), %s2816_s22, 8  ;;  %s2923_s14 = scalar_lea.vmem (%p2895_p3), [#allocation4], %s2629_s7 }
  0x17   : > { %s167_s9 = sadd.s32 (%p2895_p3), %s2647_s8, %s2631_s6 }
  0x18   : > { %s2633_s10 = sshll.u32 (%p2895_p3), %s167_s9, 3 }
  0x19   : > { %s2918_s13 = scalar_lea.vmem (%p2895_p3), %s4020_s2, %s2633_s10 }
  0x1a   : > { %v323_v0 = vld [vmem:[%s2918_s13] sm:$0xff] (%p2895_p3)  ;;  %v325_v1 = vld [vmem:[%s2918_s13 + $0x8] sm:$0xff] (%p2895_p3)  ;;  %v327_v2 = vld [vmem:[%s2918_s13 + $0x10] sm:$0xff] (%p2895_p3) }
  0x1b   : > { %324 = vst [vmem:[%s2923_s14] sm:$0xff] %v323_v0  ;;  %326 = vst [vmem:[%s2923_s14 + $0x8] sm:$0xff] %v325_v1  ;;  %v329_v3 = vld [vmem:[%s2918_s13 + $0x18] sm:$0xff]  ;;  %v331_v4 = vld [vmem:[%s2918_s13 + $0x20] sm:$0xff] }
  0x1c   : > { %328 = vst [vmem:[%s2923_s14 + $0x10] sm:$0xff] %v327_v2  ;;  %v333_v5 = vld [vmem:[%s2918_s13 + $0x28] sm:$0xff]  ;;  %330 = vst [vmem:[%s2923_s14 + $0x18] sm:$0xff] %v329_v3  ;;  %v335_v6 = vld [vmem:[%s2918_s13 + $0x30] sm:$0xff] }
  0x1d   : > { %332 = vst [vmem:[%s2923_s14 + $0x20] sm:$0xff] %v331_v4  ;;  %334 = vst [vmem:[%s2923_s14 + $0x28] sm:$0xff] %v333_v5  ;;  %v337_v7 = vld [vmem:[%s2918_s13 + $0x38] sm:$0xff]  ;;  %v339_v8 = vld [vmem:[%s2918_s13 + $0x100] sm:$0xff] }
  0x1e   : > { %336 = vst [vmem:[%s2923_s14 + $0x30] sm:$0xff] %v335_v6  ;;  %338 = vst [vmem:[%s2923_s14 + $0x38] sm:$0xff] %v337_v7  ;;  %v341_v9 = vld [vmem:[%s2918_s13 + $0x108] sm:$0xff]  ;;  %v343_v10 = vld [vmem:[%s2918_s13 + $0x110] sm:$0xff] }
  0x1f   : > { %340 = vst [vmem:[%s2923_s14 + $0x40] sm:$0xff] %v339_v8  ;;  %v345_v11 = vld [vmem:[%s2918_s13 + $0x118] sm:$0xff]  ;;  %342 = vst [vmem:[%s2923_s14 + $0x48] sm:$0xff] %v341_v9  ;;  %v347_v12 = vld [vmem:[%s2918_s13 + $0x120] sm:$0xff] }
  0x20   : > { %344 = vst [vmem:[%s2923_s14 + $0x50] sm:$0xff] %v343_v10  ;;  %346 = vst [vmem:[%s2923_s14 + $0x58] sm:$0xff] %v345_v11  ;;  %v349_v13 = vld [vmem:[%s2918_s13 + $0x128] sm:$0xff]  ;;  %v351_v14 = vld [vmem:[%s2918_s13 + $0x130] sm:$0xff] }
  0x21   : > { %348 = vst [vmem:[%s2923_s14 + $0x60] sm:$0xff] %v347_v12  ;;  %350 = vst [vmem:[%s2923_s14 + $0x68] sm:$0xff] %v349_v13  ;;  %v353_v15 = vld [vmem:[%s2918_s13 + $0x138] sm:$0xff]  ;;  %v355_v16 = vld [vmem:[%s2918_s13 + $0x200] sm:$0xff] }
  0x22   : > { %352 = vst [vmem:[%s2923_s14 + $0x70] sm:$0xff] %v351_v14  ;;  %v357_v17 = vld [vmem:[%s2918_s13 + $0x208] sm:$0xff]  ;;  %354 = vst [vmem:[%s2923_s14 + $0x78] sm:$0xff] %v353_v15  ;;  %v359_v18 = vld [vmem:[%s2918_s13 + $0x210] sm:$0xff] }
  0x23   : > { %356 = vst [vmem:[%s2923_s14 + $0x80] sm:$0xff] %v355_v16  ;;  %358 = vst [vmem:[%s2923_s14 + $0x88] sm:$0xff] %v357_v17  ;;  %v361_v19 = vld [vmem:[%s2918_s13 + $0x218] sm:$0xff]  ;;  %v363_v20 = vld [vmem:[%s2918_s13 + $0x220] sm:$0xff] }
  0x24   : > { %360 = vst [vmem:[%s2923_s14 + $0x90] sm:$0xff] %v359_v18  ;;  %362 = vst [vmem:[%s2923_s14 + $0x98] sm:$0xff] %v361_v19  ;;  %v365_v21 = vld [vmem:[%s2918_s13 + $0x228] sm:$0xff]  ;;  %v367_v22 = vld [vmem:[%s2918_s13 + $0x230] sm:$0xff] }
  0x25   : > { %364 = vst [vmem:[%s2923_s14 + $0xa0] sm:$0xff] %v363_v20  ;;  %v369_v23 = vld [vmem:[%s2918_s13 + $0x238] sm:$0xff]  ;;  %366 = vst [vmem:[%s2923_s14 + $0xa8] sm:$0xff] %v365_v21  ;;  %v371_v24 = vld [vmem:[%s2918_s13 + $0x300] sm:$0xff] }
  0x26   : > { %368 = vst [vmem:[%s2923_s14 + $0xb0] sm:$0xff] %v367_v22  ;;  %370 = vst [vmem:[%s2923_s14 + $0xb8] sm:$0xff] %v369_v23  ;;  %v373_v25 = vld [vmem:[%s2918_s13 + $0x308] sm:$0xff]  ;;  %v375_v26 = vld [vmem:[%s2918_s13 + $0x310] sm:$0xff] }
  0x27   : > { %372 = vst [vmem:[%s2923_s14 + $0xc0] sm:$0xff] %v371_v24  ;;  %374 = vst [vmem:[%s2923_s14 + $0xc8] sm:$0xff] %v373_v25  ;;  %v377_v27 = vld [vmem:[%s2918_s13 + $0x318] sm:$0xff]  ;;  %v379_v28 = vld [vmem:[%s2918_s13 + $0x320] sm:$0xff] }
  0x28   : > { %376 = vst [vmem:[%s2923_s14 + $0xd0] sm:$0xff] %v375_v26  ;;  %v381_v29 = vld [vmem:[%s2918_s13 + $0x328] sm:$0xff]  ;;  %378 = vst [vmem:[%s2923_s14 + $0xd8] sm:$0xff] %v377_v27  ;;  %v383_v30 = vld [vmem:[%s2918_s13 + $0x330] sm:$0xff] }
  0x29   : > { %380 = vst [vmem:[%s2923_s14 + $0xe0] sm:$0xff] %v379_v28  ;;  %382 = vst [vmem:[%s2923_s14 + $0xe8] sm:$0xff] %v381_v29  ;;  %v385_v31 = vld [vmem:[%s2918_s13 + $0x338] sm:$0xff]  ;;  %v387_v32 = vld [vmem:[%s2918_s13 + $0x400] sm:$0xff] }
  0x2a   : > { %384 = vst [vmem:[%s2923_s14 + $0xf0] sm:$0xff] %v383_v30  ;;  %386 = vst [vmem:[%s2923_s14 + $0xf8] sm:$0xff] %v385_v31  ;;  %v389_v33 = vld [vmem:[%s2918_s13 + $0x408] sm:$0xff]  ;;  %v391_v34 = vld [vmem:[%s2918_s13 + $0x410] sm:$0xff] }
  0x2b   : > { %388 = vst [vmem:[%s2923_s14 + $0x100] sm:$0xff] %v387_v32  ;;  %v393_v35 = vld [vmem:[%s2918_s13 + $0x418] sm:$0xff]  ;;  %390 = vst [vmem:[%s2923_s14 + $0x108] sm:$0xff] %v389_v33  ;;  %v395_v36 = vld [vmem:[%s2918_s13 + $0x420] sm:$0xff] }
  0x2c   : > { %392 = vst [vmem:[%s2923_s14 + $0x110] sm:$0xff] %v391_v34  ;;  %394 = vst [vmem:[%s2923_s14 + $0x118] sm:$0xff] %v393_v35  ;;  %v397_v37 = vld [vmem:[%s2918_s13 + $0x428] sm:$0xff]  ;;  %v399_v38 = vld [vmem:[%s2918_s13 + $0x430] sm:$0xff] }
  0x2d   : > { %396 = vst [vmem:[%s2923_s14 + $0x120] sm:$0xff] %v395_v36  ;;  %398 = vst [vmem:[%s2923_s14 + $0x128] sm:$0xff] %v397_v37  ;;  %v401_v39 = vld [vmem:[%s2918_s13 + $0x438] sm:$0xff]  ;;  %v403_v40 = vld [vmem:[%s2918_s13 + $0x500] sm:$0xff] }
  0x2e   : > { %400 = vst [vmem:[%s2923_s14 + $0x130] sm:$0xff] %v399_v38  ;;  %v405_v41 = vld [vmem:[%s2918_s13 + $0x508] sm:$0xff]  ;;  %402 = vst [vmem:[%s2923_s14 + $0x138] sm:$0xff] %v401_v39  ;;  %v407_v42 = vld [vmem:[%s2918_s13 + $0x510] sm:$0xff] }
  0x2f   : > { %404 = vst [vmem:[%s2923_s14 + $0x140] sm:$0xff] %v403_v40  ;;  %406 = vst [vmem:[%s2923_s14 + $0x148] sm:$0xff] %v405_v41  ;;  %v409_v43 = vld [vmem:[%s2918_s13 + $0x518] sm:$0xff]  ;;  %v411_v44 = vld [vmem:[%s2918_s13 + $0x520] sm:$0xff] }
  0x30   : > { %408 = vst [vmem:[%s2923_s14 + $0x150] sm:$0xff] %v407_v42  ;;  %410 = vst [vmem:[%s2923_s14 + $0x158] sm:$0xff] %v409_v43  ;;  %v413_v45 = vld [vmem:[%s2918_s13 + $0x528] sm:$0xff]  ;;  %v415_v46 = vld [vmem:[%s2918_s13 + $0x530] sm:$0xff] }
  0x31   : > { %412 = vst [vmem:[%s2923_s14 + $0x160] sm:$0xff] %v411_v44  ;;  %v417_v47 = vld [vmem:[%s2918_s13 + $0x538] sm:$0xff]  ;;  %414 = vst [vmem:[%s2923_s14 + $0x168] sm:$0xff] %v413_v45  ;;  %v419_v48 = vld [vmem:[%s2918_s13 + $0x600] sm:$0xff] }
  0x32   : > { %416 = vst [vmem:[%s2923_s14 + $0x170] sm:$0xff] %v415_v46  ;;  %418 = vst [vmem:[%s2923_s14 + $0x178] sm:$0xff] %v417_v47  ;;  %v421_v49 = vld [vmem:[%s2918_s13 + $0x608] sm:$0xff]  ;;  %v423_v50 = vld [vmem:[%s2918_s13 + $0x610] sm:$0xff] }
  0x33   : > { %420 = vst [vmem:[%s2923_s14 + $0x180] sm:$0xff] %v419_v48  ;;  %422 = vst [vmem:[%s2923_s14 + $0x188] sm:$0xff] %v421_v49  ;;  %v425_v51 = vld [vmem:[%s2918_s13 + $0x618] sm:$0xff]  ;;  %v427_v52 = vld [vmem:[%s2918_s13 + $0x620] sm:$0xff] }
  0x34   : > { %424 = vst [vmem:[%s2923_s14 + $0x190] sm:$0xff] %v423_v50  ;;  %v429_v53 = vld [vmem:[%s2918_s13 + $0x628] sm:$0xff]  ;;  %426 = vst [vmem:[%s2923_s14 + $0x198] sm:$0xff] %v425_v51  ;;  %v431_v54 = vld [vmem:[%s2918_s13 + $0x630] sm:$0xff] }
  0x35   : > { %428 = vst [vmem:[%s2923_s14 + $0x1a0] sm:$0xff] %v427_v52  ;;  %430 = vst [vmem:[%s2923_s14 + $0x1a8] sm:$0xff] %v429_v53  ;;  %v433_v55 = vld [vmem:[%s2918_s13 + $0x638] sm:$0xff]  ;;  %v435_v56 = vld [vmem:[%s2918_s13 + $0x700] sm:$0xff] }
  0x36   : > { %432 = vst [vmem:[%s2923_s14 + $0x1b0] sm:$0xff] %v431_v54  ;;  %434 = vst [vmem:[%s2923_s14 + $0x1b8] sm:$0xff] %v433_v55  ;;  %v437_v57 = vld [vmem:[%s2918_s13 + $0x708] sm:$0xff]  ;;  %v439_v58 = vld [vmem:[%s2918_s13 + $0x710] sm:$0xff] }
  0x37   : > { %436 = vst [vmem:[%s2923_s14 + $0x1c0] sm:$0xff] %v435_v56  ;;  %v441_v59 = vld [vmem:[%s2918_s13 + $0x718] sm:$0xff]  ;;  %438 = vst [vmem:[%s2923_s14 + $0x1c8] sm:$0xff] %v437_v57  ;;  %v443_v60 = vld [vmem:[%s2918_s13 + $0x720] sm:$0xff] }
  0x38   : > { %440 = vst [vmem:[%s2923_s14 + $0x1d0] sm:$0xff] %v439_v58  ;;  %442 = vst [vmem:[%s2923_s14 + $0x1d8] sm:$0xff] %v441_v59  ;;  %v445_v61 = vld [vmem:[%s2918_s13 + $0x728] sm:$0xff]  ;;  %v447_v62 = vld [vmem:[%s2918_s13 + $0x730] sm:$0xff] }
  0x39   : > { %444 = vst [vmem:[%s2923_s14 + $0x1e0] sm:$0xff] %v443_v60  ;;  %446 = vst [vmem:[%s2923_s14 + $0x1e8] sm:$0xff] %v445_v61  ;;  %v449_v63 = vld [vmem:[%s2918_s13 + $0x738] sm:$0xff] }
  0x3a   : > { %448 = vst [vmem:[%s2923_s14 + $0x1f0] sm:$0xff] %v447_v62  ;;  %450 = vst [vmem:[%s2923_s14 + $0x1f8] sm:$0xff] %v449_v63 }
  0x3b PF: > { %456 = sbr.rel (!%p2895_p3) target bundleno = 73 (0x49), region = 62  ;;  %s458_s15 = sand.u32 (%p2895_p3), 1, %s2800_s18  }
  0x3c   : > { %s2648_s16 = sshll.u32 (%p2895_p3), %s2816_s22, 5  ;;  %s2634_s26 = sshll.u32 (%p2895_p3), %s458_s15, 6 }
  0x3d   : > { %s463_s27 = sadd.s32 (%p2895_p3), %s2812_s21, %s2648_s16  ;;  %s460_s7 = scalar_lea.vmem (%p2895_p3), [#allocation5], %s2634_s26 }
  0x3e   : > { %s2637_s28 = sshll.u32 (%p2895_p3), %s463_s27, 3 }
  0x3f   : > { %s465_s6 = scalar_lea.vmem (%p2895_p3), %s4021_s3, %s2637_s28 }
  0x40   : > { %v507_v0 = vld [vmem:[%s465_s6] sm:$0xff] (%p2895_p3) }
  0x41   : > { %v509_v1 = vld [vmem:[%s465_s6 + $0x20] sm:$0xff] (%p2895_p3)  ;;  %508 = vst [vmem:[%s460_s7] sm:$0xff] (%p2895_p3), %v507_v0 }
  0x42   : > { %v511_v2 = vld [vmem:[%s465_s6 + $0x40] sm:$0xff]  ;;  %510 = vst [vmem:[%s460_s7 + $0x8] sm:$0xff] %v509_v1 }
  0x43   : > { %512 = vst [vmem:[%s460_s7 + $0x10] sm:$0xff] %v511_v2  ;;  %v513_v3 = vld [vmem:[%s465_s6 + $0x60] sm:$0xff] }
  0x44   : > { %v515_v4 = vld [vmem:[%s465_s6 + $0x80] sm:$0xff]  ;;  %514 = vst [vmem:[%s460_s7 + $0x18] sm:$0xff] %v513_v3 }
  0x45   : > { %v517_v5 = vld [vmem:[%s465_s6 + $0xa0] sm:$0xff]  ;;  %516 = vst [vmem:[%s460_s7 + $0x20] sm:$0xff] %v515_v4 }
  0x46   : > { %518 = vst [vmem:[%s460_s7 + $0x28] sm:$0xff] %v517_v5  ;;  %v519_v6 = vld [vmem:[%s465_s6 + $0xc0] sm:$0xff] }
  0x47   : > { %v521_v7 = vld [vmem:[%s465_s6 + $0xe0] sm:$0xff]  ;;  %520 = vst [vmem:[%s460_s7 + $0x30] sm:$0xff] %v519_v6 }
  0x48   : > { %522 = vst [vmem:[%s460_s7 + $0x38] sm:$0xff] %v521_v7 }
  0x49 PF: > { %p2638_p7 = scmp.ge.s32.totalorder %s2820_s23, 1  ;;  %p527_p8 = scmp.lt.s32.totalorder %s2820_s23, 9 }
  0x4b   : > { %p528_p9 = pnand %p2638_p7, %p527_p8 }
  0x4d   : > { %531 = sbr.rel (%p528_p9) target bundleno = 1161 (0x489), region = 100 }
  0x54   : > { %s534_s25 = sand.u32 1, %s2796_s17   ;;  %p571_p10 = scmp.lt.s32.totalorder %s2808_s20, 1 }
  0x55   : > { %s2639_s8 = sshll.u32 %s534_s25, 9  ;;  %s2640_s9 = sshll.u32 %s534_s25, 6 }
  0x56   : > { %s4166_s20 = smov (!%p571_p10, %s2808_s20), 1  ;;  %s3073_s26 = scalar_lea.vmem [#allocation4], %s2639_s8 }
  0x57   : > { %s2641_s10 = sshll.u32 %s4166_s20, 3  ;;  %s3075_s27 = scalar_lea.vmem [#allocation5], %s2640_s9 }
  0x58   : > { %s3066_s13 = scalar_lea.vmem %s4019_s1, %s2641_s10  ;;  %s3071_s16 = scalar_lea.vmem %s4022_s4, %s2641_s10 }
  0x59   : > { %p2643_p11 = scmp.ne.s32.totalorder %s2804_s19, 0 }
  0x5a   : > { %vm586_vm0 = vcmask (!%p2643_p11), 7168   ;;  %v2822_v8 = vmov (!%p2643_p11), 0.0  }
  0x5b   : > { %585 = sbr.rel (%p2643_p11) target bundleno = 98 (0x62), region = 112  ;;  %587 = vst.msk [vmem:[%s3071_s16] sm:$0xff] (!%p2643_p11), %vm586_vm0, %v2822_v8 }
  0x62 PF: > { %v589_v9 = vld [vmem:[%s3075_s27] sm:$0xff]  ;;  %vm603_vm1 = vcmask 64512   ;;  %v591_v10 = vld [vmem:[%s3075_s27 + $0x10] sm:$0xff]  ;;  %v590_v11 = vld [vmem:[%s3075_s27 + $0x8] sm:$0xff]  ;;  %v4023_v2 = vlaneseq  ;;  %vm1780_vm2 = vcmask 1041409   ;;  %vm1782_vm3 = vcmask 1042434  }
  0x63   : > { %v604_v12 = vsel %vm603_vm1, %v589_v9, -inf  ;;  %v610_v13 = vsel %vm603_vm1, %v591_v10, -inf  ;;  %v592_v14 = vld [vmem:[%s3075_s27 + $0x18] sm:$0xff]  ;;  %v607_v15 = vsel %vm603_vm1, %v590_v11, -inf  ;;  %v593_v17 = vld [vmem:[%s3075_s27 + $0x20] sm:$0xff]  ;;  %v594_v18 = vld [vmem:[%s3075_s27 + $0x28] sm:$0xff] }
  0x64   : > { %605 = vmax.xlane.f32.xlu0 %v604_v12  ;;  %611 = vmax.xlane.f32.xlu1 %v610_v13  ;;  %v613_v16 = vsel %vm603_vm1, %v592_v14, -inf  ;;  %v616_v19 = vsel %vm603_vm1, %v593_v17, -inf  ;;  %v619_v20 = vsel %vm603_vm1, %v594_v18, -inf  ;;  %v595_v21 = vld [vmem:[%s3075_s27 + $0x30] sm:$0xff]  ;;  %v596_v22 = vld [vmem:[%s3075_s27 + $0x38] sm:$0xff]  ;;  %v3113_v5 = vshrl.u32 %v4023_v2, 7 }
  0x65   : > { %v622_v23 = vsel %vm603_vm1, %v595_v21, -inf  ;;  %v625_v24 = vsel %vm603_vm1, %v596_v22, -inf  ;;  %vm1784_vm4 = vcmask 1043459   ;;  %vm1786_vm5 = vcmask 1044484   ;;  %s3978_s17 = sld [smem:[#allocation3]]  ;;  %s2644_s20 = sshll.u32 %s2804_s19, 3 }
  0x66   : > { %v3116_v7 = vsub.s32 1, %v3113_v5  ;;  %v3119_v8 = vsub.s32 0, %v3113_v5  ;;  %vm1790_vm6 = vcmask 1046534   ;;  %vm1788_vm7 = vcmask 1045509  }
  0x67   : > { %vm1792_vm8 = vcmask 1047559   ;;  %vm2518_vm10 = vcmask 7168  }
  0x68   : > { %608 = vmax.xlane.f32.xlu0 %v607_v15  ;;  %614 = vmax.xlane.f32.xlu1 %v613_v16  ;;  %4068 = vst [vmem:[#allocation6_spill] sm:$0xff] %v3119_v8 }
  0x6c   : > { %617 = vmax.xlane.f32.xlu0 %v616_v19  ;;  %620 = vmax.xlane.f32.xlu1 %v619_v20 }
  0x70   : > { %623 = vmax.xlane.f32.xlu0 %v622_v23  ;;  %626 = vmax.xlane.f32.xlu1 %v625_v24  ;;  %v3143_v23 = vsub.s32 3, %v3113_v5 }
  0xf1   : > { %v606_v25 = vpop.xlane.xlu0 %605  ;;  %v612_v26 = vpop.xlane.xlu1 %611 }
  0xf2   : > { %v628_v27 = vsub.f32 %v589_v9, %v606_v25  ;;  %v630_v28 = vsub.f32 %v591_v10, %v612_v26 }
  0xf4   : > { %v636_v29 = vmul.f32 1.442695, %v628_v27  ;;  %v640_v30 = vmul.f32 1.442695, %v630_v28 }
  0xf5   : > { %v609_v31 = vpop.xlane.xlu0 %608  ;;  %v615_v32 = vpop.xlane.xlu1 %614 }
  0xf6   : > { %2707 = vpow2.f32 %v636_v29  ;;  %v629_v33 = vsub.f32 %v590_v11, %v609_v31  ;;  %v631_v34 = vsub.f32 %v592_v14, %v615_v32  ;;  %v3128_v14 = vsub.s32 2, %v3113_v5 }
  0xf7   : > { %2709 = vpow2.f32 %v640_v30 }
  0xf8   : > { %v638_v35 = vmul.f32 1.442695, %v629_v33  ;;  %v642_v36 = vmul.f32 1.442695, %v631_v34  ;;  %v3158_v33 = vsub.s32 6, %v3113_v5 }
  0xf9   : > { %v618_v37 = vpop.xlane.xlu0 %617  ;;  %v621_v38 = vpop.xlane.xlu1 %620 }
  0xfa   : > { %2711 = vpow2.f32 %v638_v35  ;;  %v632_v39 = vsub.f32 %v593_v17, %v618_v37  ;;  %v633_v40 = vsub.f32 %v594_v18, %v621_v38  ;;  %v3167_v37 = vsub.s32 4, %v3113_v5 }
  0xfb   : > { %2713 = vpow2.f32 %v642_v36 }
  0xfc   : > { %v644_v41 = vmul.f32 1.442695, %v632_v39  ;;  %v646_v42 = vmul.f32 1.442695, %v633_v40 }
  0xfd   : > { %v624_v43 = vpop.xlane.xlu0 %623  ;;  %v627_v44 = vpop.xlane.xlu1 %626 }
  0xfe   : > { %2715 = vpow2.f32 %v644_v41  ;;  %v634_v45 = vsub.f32 %v595_v21, %v624_v43  ;;  %v635_v46 = vsub.f32 %v596_v22, %v627_v44 }
  0xff   : > { %2717 = vpow2.f32 %v646_v42 }
 0x100   : > { %v2708_v47 = vpop.eup %2707  ;;  %v648_v48 = vmul.f32 1.442695, %v634_v45  ;;  %v650_v49 = vmul.f32 1.442695, %v635_v46  ;;  %v3185_v46 = vsub.s32 5, %v3113_v5 }
 0x101   : > { %v2710_v50 = vpop.eup %2709  ;;  %v652_v51 = vsel %vm603_vm1, %v2708_v47, 0.0 }
 0x102   : > { %2719 = vpow2.f32 %v648_v48  ;;  %653 = vadd.xlane.f32.xlu0 %v652_v51  ;;  %v658_v52 = vsel %vm603_vm1, %v2710_v50, 0.0 }
 0x103   : > { %2721 = vpow2.f32 %v650_v49 }
 0x104   : > { %v2712_v53 = vpop.eup %2711 }
 0x105   : > { %v2714_v54 = vpop.eup %2713  ;;  %v655_v55 = vsel %vm603_vm1, %v2712_v53, 0.0 }
 0x106   : > { %659 = vadd.xlane.f32.xlu0 %v658_v52  ;;  %656 = vadd.xlane.f32.xlu1 %v655_v55  ;;  %v661_v56 = vsel %vm603_vm1, %v2714_v54, 0.0 }
 0x108   : > { %v3099_v57 = vpop.eup %2715 }
 0x109   : > { %v2718_v58 = vpop.eup %2717  ;;  %v664_v59 = vsel %vm603_vm1, %v3099_v57, 0.0 }
 0x10a   : > { %662 = vadd.xlane.f32.xlu1 %v661_v56  ;;  %665 = vadd.xlane.f32.xlu0 %v664_v59  ;;  %v667_v60 = vsel %vm603_vm1, %v2718_v58, 0.0 }
 0x10c   : > { %v3104_v61 = vpop.eup %2719 }
 0x10d   : > { %v3106_v62 = vpop.eup %2721  ;;  %v670_v63 = vsel %vm603_vm1, %v3104_v61, 0.0 }
 0x10e   : > { %668 = vadd.xlane.f32.xlu1 %v667_v60  ;;  %671 = vadd.xlane.f32.xlu0 %v670_v63  ;;  %v673_v0 = vsel %vm603_vm1, %v3106_v62, 0.0 }
 0x112   : > { %674 = vadd.xlane.f32.xlu1 %v673_v0 }
 0x18f   : > { %v654_v1 = vpop.xlane.xlu0 %653 }
 0x190   : > { %2723 = vrcp.f32 %v654_v1 }
 0x193   : > { %v657_v3 = vpop.xlane.xlu1 %656  ;;  %v660_v4 = vpop.xlane.xlu0 %659 }
 0x194   : > { %2725 = vrcp.f32 %v657_v3 }
 0x195   : > { %2727 = vrcp.f32 %v660_v4  ;;  %v3219_v4 = vsub.s32 7, %v3113_v5 }
 0x197   : > { %v663_v6 = vpop.xlane.xlu1 %662  ;;  %v666_v25 = vpop.xlane.xlu0 %665 }
 0x19a   : > { %v2724_v9 = vpop.eup %2723 }
 0x19b   : > { %v3121_v10 = vmul.f32 %v2724_v9, %v2708_v47  ;;  %v669_v11 = vpop.xlane.xlu1 %668  ;;  %v672_v49 = vpop.xlane.xlu0 %671 }
 0x19c   : > { %2729 = vrcp.f32 %v669_v11 }
 0x19d   : > { %v766_v12 = vrot.slane %v3121_v10, %v3116_v7  ;;  %v759_v13 = vrot.slane %v3121_v10, %v3119_v8  ;;  %2731 = vrcp.f32 %v663_v6  ;;  %v773_v20 = vrot.slane %v3121_v10, %v3128_v14 }
 0x19e   : > { %v2726_v15 = vpop.eup %2725  ;;  %v780_v27 = vrot.slane %v3121_v10, %v3143_v23  ;;  %2733 = vrcp.f32 %v666_v25  ;;  %v787_v42 = vrot.slane %v3121_v10, %v3167_v37  ;;  %v794_v51 = vrot.slane %v3121_v10, %v3185_v46 }
 0x19f   : > { %v2728_v16 = vpop.eup %2727  ;;  %v3130_v17 = vmul.f32 %v2726_v15, %v2712_v53  ;;  %768 = vbcast.lane.b32.xlu1 %v766_v12, 256  ;;  %761 = vbcast.lane.b32.xlu0 %v759_v13, 256  ;;  %2735 = vrcp.f32 %v672_v49  ;;  %v675_v0 = vpop.xlane.xlu1 %674  ;;  %v808_v6 = vrot.slane %v3121_v10, %v3219_v4 }
 0x1a0   : > { %v3132_v18 = vmul.f32 %v2728_v16, %v2710_v50  ;;  %2737 = vrcp.f32 %v675_v0 }
 0x1a1   : > { %v815_v19 = vrot.slane %v3130_v17, %v3119_v8  ;;  %v822_v21 = vrot.slane %v3130_v17, %v3116_v7  ;;  %v829_v26 = vrot.slane %v3130_v17, %v3128_v14  ;;  %v836_v35 = vrot.slane %v3130_v17, %v3143_v23 }
 0x1a2   : > { %v871_v22 = vrot.slane %v3132_v18, %v3119_v8  ;;  %v878_v31 = vrot.slane %v3132_v18, %v3116_v7  ;;  %v885_v32 = vrot.slane %v3132_v18, %v3128_v14  ;;  %v843_v39 = vrot.slane %v3130_v17, %v3167_v37 }
 0x1a3   : > { %817 = vbcast.lane.b32.xlu1 %v815_v19, 256  ;;  %775 = vbcast.lane.b32.xlu0 %v773_v20, 256  ;;  %v892_v44 = vrot.slane %v3132_v18, %v3143_v23  ;;  %v850_v47 = vrot.slane %v3130_v17, %v3185_v46  ;;  %v899_v53 = vrot.slane %v3132_v18, %v3167_v37 }
 0x1a4   : > { %v906_v56 = vrot.slane %v3132_v18, %v3185_v46  ;;  %v857_v63 = vrot.slane %v3130_v17, %v3158_v33  ;;  %v913_v11 = vrot.slane %v3132_v18, %v3158_v33  ;;  %v864_v12 = vrot.slane %v3130_v17, %v3219_v4 }
 0x1a6   : > { %v2730_v24 = vpop.eup %2729 }
 0x1a7   : > { %824 = vbcast.lane.b32.xlu1 %v822_v21, 256  ;;  %873 = vbcast.lane.b32.xlu0 %v871_v22, 256  ;;  %v2732_v28 = vpop.eup %2731  ;;  %v3149_v29 = vmul.f32 %v2730_v24, %v2718_v58  ;;  %v920_v22 = vrot.slane %v3132_v18, %v3219_v4 }
 0x1a8   : > { %v3151_v30 = vmul.f32 %v2732_v28, %v2714_v54  ;;  %v2734_v40 = vpop.eup %2733  ;;  %v801_v54 = vrot.slane %v3121_v10, %v3158_v33 }
 0x1a9   : > { %v1081_v34 = vrot.slane %v3149_v29, %v3158_v33  ;;  %v3174_v41 = vmul.f32 %v2734_v40, %v3099_v57  ;;  %v1039_v52 = vrot.slane %v3149_v29, %v3119_v8  ;;  %v1046_v57 = vrot.slane %v3149_v29, %v3116_v7  ;;  %v2736_v58 = vpop.eup %2735 }
 0x1aa   : > { %v934_v36 = vrot.slane %v3151_v30, %v3116_v7  ;;  %v927_v38 = vrot.slane %v3151_v30, %v3119_v8  ;;  %v941_v43 = vrot.slane %v3151_v30, %v3128_v14  ;;  %v948_v50 = vrot.slane %v3151_v30, %v3143_v23  ;;  %v2738_v15 = vpop.eup %2737 }
 0x1ab   : > { %831 = vbcast.lane.b32.xlu1 %v829_v26, 256  ;;  %782 = vbcast.lane.b32.xlu0 %v780_v27, 256  ;;  %v990_v45 = vrot.slane %v3174_v41, %v3116_v7  ;;  %v983_v48 = vrot.slane %v3174_v41, %v3119_v8  ;;  %v997_v55 = vrot.slane %v3174_v41, %v3128_v14 }
 0x1ac   : > { %v3208_v59 = vmul.f32 %v2736_v58, %v3104_v61  ;;  %v1004_v60 = vrot.slane %v3174_v41, %v3143_v23  ;;  %v955_v1 = vrot.slane %v3151_v30, %v3167_v37  ;;  %v1053_v61 = vrot.slane %v3149_v29, %v3128_v14  ;;  %v708_v58 = vld [vmem:[%s3073_s26 + $0x80] sm:$0xff] }
 0x1ad   : > { %v1011_v13 = vrot.slane %v3174_v41, %v3167_v37  ;;  %v3234_v10 = vmul.f32 %v2738_v15, %v3106_v62  ;;  %v962_v16 = vrot.slane %v3151_v30, %v3185_v46  ;;  %v1060_v17 = vrot.slane %v3149_v29, %v3143_v23  ;;  %v702_v15 = vld [vmem:[%s3073_s26 + $0x50] sm:$0xff] }
 0x1ae   : > { %v1095_v3 = vrot.slane %v3208_v59, %v3119_v8  ;;  %v1102_v9 = vrot.slane %v3208_v59, %v3116_v7  ;;  %v1109_v19 = vrot.slane %v3208_v59, %v3128_v14  ;;  %v969_v21 = vrot.slane %v3151_v30, %v3158_v33 }
 0x1af   : > { %880 = vbcast.lane.b32.xlu1 %v878_v31, 256  ;;  %887 = vbcast.lane.b32.xlu0 %v885_v32, 256  ;;  %v1158_v20 = vrot.slane %v3234_v10, %v3116_v7  ;;  %v1151_v62 = vrot.slane %v3234_v10, %v3119_v8  ;;  %v1067_v24 = vrot.slane %v3149_v29, %v3167_v37 }
 0x1b0   : > { %v1018_v7 = vrot.slane %v3174_v41, %v3185_v46  ;;  %v1165_v25 = vrot.slane %v3234_v10, %v3128_v14  ;;  %v1116_v26 = vrot.slane %v3208_v59, %v3143_v23  ;;  %v1025_v27 = vrot.slane %v3174_v41, %v3158_v33 }
 0x1b1   : > { %v976_v18 = vrot.slane %v3151_v30, %v3219_v4  ;;  %v1123_v28 = vrot.slane %v3208_v59, %v3167_v37  ;;  %v1074_v14 = vrot.slane %v3149_v29, %v3185_v46  ;;  %v1032_v31 = vrot.slane %v3174_v41, %v3219_v4 }
 0x1b2   : > { %v1172_v32 = vrot.slane %v3234_v10, %v3143_v23  ;;  %v1130_v30 = vrot.slane %v3208_v59, %v3185_v46  ;;  %v1179_v23 = vrot.slane %v3234_v10, %v3167_v37  ;;  %v1186_v41 = vrot.slane %v3234_v10, %v3185_v46 }
 0x1b3   : > { %838 = vbcast.lane.b32.xlu1 %v836_v35, 256  ;;  %936 = vbcast.lane.b32.xlu0 %v934_v36, 256  ;;  %v1088_v35 = vrot.slane %v3149_v29, %v3219_v4  ;;  %v693_v36 = vld [vmem:[%s3073_s26 + $0x8] sm:$0xff]  ;;  %v1137_v49 = vrot.slane %v3208_v59, %v3158_v33  ;;  %v1193_v37 = vrot.slane %v3234_v10, %v3158_v33 }
 0x1b4   : > { %v1144_v0 = vrot.slane %v3208_v59, %v3219_v4  ;;  %v1200_v59 = vrot.slane %v3234_v10, %v3219_v4  ;;  %v710_v4 = vld [vmem:[%s3073_s26 + $0x90] sm:$0xff] }
 0x1b7   : > { %929 = vbcast.lane.b32.xlu1 %v927_v38, 256  ;;  %845 = vbcast.lane.b32.xlu0 %v843_v39, 256  ;;  %v692_v38 = vld [vmem:[%s3073_s26] sm:$0xff] }
 0x1bb   : > { %789 = vbcast.lane.b32.xlu1 %v787_v42, 256  ;;  %943 = vbcast.lane.b32.xlu0 %v941_v43, 256 }
 0x1bf   : > { %894 = vbcast.lane.b32.xlu1 %v892_v44, 256  ;;  %992 = vbcast.lane.b32.xlu0 %v990_v45, 256  ;;  %v700_v44 = vld [vmem:[%s3073_s26 + $0x40] sm:$0xff]  ;;  %v694_v45 = vld [vmem:[%s3073_s26 + $0x10] sm:$0xff] }
 0x1c3   : > { %852 = vbcast.lane.b32.xlu0 %v850_v47, 256  ;;  %985 = vbcast.lane.b32.xlu1 %v983_v48, 256 }
 0x1c7   : > { %950 = vbcast.lane.b32.xlu0 %v948_v50, 256  ;;  %796 = vbcast.lane.b32.xlu1 %v794_v51, 256 }
 0x1cb   : > { %1041 = vbcast.lane.b32.xlu0 %v1039_v52, 256  ;;  %901 = vbcast.lane.b32.xlu1 %v899_v53, 256 }
 0x1cf   : > { %803 = vbcast.lane.b32.xlu0 %v801_v54, 256  ;;  %999 = vbcast.lane.b32.xlu1 %v997_v55, 256 }
 0x1d3   : > { %908 = vbcast.lane.b32.xlu0 %v906_v56, 256  ;;  %1048 = vbcast.lane.b32.xlu1 %v1046_v57, 256  ;;  %v701_v57 = vld [vmem:[%s3073_s26 + $0x48] sm:$0xff] }
 0x1d7   : > { %1006 = vbcast.lane.b32.xlu0 %v1004_v60, 256  ;;  %859 = vbcast.lane.b32.xlu1 %v857_v63, 256 }
 0x1db   : > { %957 = vbcast.lane.b32.xlu1 %v955_v1, 256  ;;  %1097 = vbcast.lane.b32.xlu0 %v1095_v3, 256 }
 0x1df   : > { %1055 = vbcast.lane.b32.xlu1 %v1053_v61, 256  ;;  %810 = vbcast.lane.b32.xlu0 %v808_v6, 256 }
 0x1e3   : > { %1104 = vbcast.lane.b32.xlu1 %v1102_v9, 256  ;;  %915 = vbcast.lane.b32.xlu0 %v913_v11, 256 }
 0x1e7   : > { %866 = vbcast.lane.b32.xlu1 %v864_v12, 256  ;;  %1013 = vbcast.lane.b32.xlu0 %v1011_v13, 256 }
 0x1eb   : > { %964 = vbcast.lane.b32.xlu1 %v962_v16, 256  ;;  %1111 = vbcast.lane.b32.xlu0 %v1109_v19, 256  ;;  %v695_v16 = vld [vmem:[%s3073_s26 + $0x18] sm:$0xff] }
 0x1ef   : > { %1062 = vbcast.lane.b32.xlu1 %v1060_v17, 256  ;;  %1160 = vbcast.lane.b32.xlu0 %v1158_v20, 256 }
 0x1f3   : > { %1153 = vbcast.lane.b32.xlu1 %v1151_v62, 256  ;;  %971 = vbcast.lane.b32.xlu0 %v969_v21, 256 }
 0x1f7   : > { %922 = vbcast.lane.b32.xlu1 %v920_v22, 256  ;;  %1069 = vbcast.lane.b32.xlu0 %v1067_v24, 256 }
 0x1fb   : > { %1020 = vbcast.lane.b32.xlu1 %v1018_v7, 256  ;;  %1167 = vbcast.lane.b32.xlu0 %v1165_v25, 256 }
 0x1ff   : > { %1118 = vbcast.lane.b32.xlu1 %v1116_v26, 256  ;;  %1027 = vbcast.lane.b32.xlu0 %v1025_v27, 256  ;;  %v709_v26 = vld [vmem:[%s3073_s26 + $0x88] sm:$0xff] }
 0x203   : > { %978 = vbcast.lane.b32.xlu1 %v976_v18, 256  ;;  %1125 = vbcast.lane.b32.xlu0 %v1123_v28, 256 }
 0x207   : > { %1076 = vbcast.lane.b32.xlu1 %v1074_v14, 256  ;;  %1034 = vbcast.lane.b32.xlu0 %v1032_v31, 256 }
 0x20b   : > { %1174 = vbcast.lane.b32.xlu1 %v1172_v32, 256  ;;  %1132 = vbcast.lane.b32.xlu0 %v1130_v30, 256 }
 0x20f   : > { %1083 = vbcast.lane.b32.xlu1 %v1081_v34, 256  ;;  %1090 = vbcast.lane.b32.xlu0 %v1088_v35, 256 }
 0x211   : > { %v769_v39 = vpop.permute.xlu1 %768  ;;  %v762_v40 = vpop.permute.xlu0 %761 }
 0x212   : > { %v1205_v42 = vmul.f32 %v769_v39, %v693_v36  ;;  %v1204_v43 = vmul.f32 %v762_v40, %v692_v38 }
 0x213   : > { %1181 = vbcast.lane.b32.xlu1 %v1179_v23, 256  ;;  %1188 = vbcast.lane.b32.xlu0 %v1186_v41, 256 }
 0x214   : > { %v1274_v47 = vrot.slane %v1205_v42, 4  ;;  %v1268_v29 = vrot.slane %v1204_v43, 4 }
 0x215   : > { %v818_v34 = vpop.permute.xlu1 %817  ;;  %v776_v48 = vpop.permute.xlu0 %775 }
 0x216   : > { %v1275_v50 = vadd.f32 %v1274_v47, %v1205_v42  ;;  %v1269_v46 = vadd.f32 %v1268_v29, %v1204_v43  ;;  %v1212_v51 = vmul.f32 %v818_v34, %v700_v44  ;;  %v1206_v52 = vmul.f32 %v776_v48, %v694_v45  ;;  %v703_v42 = vld [vmem:[%s3073_s26 + $0x58] sm:$0xff]  ;;  %v717_v43 = vld [vmem:[%s3073_s26 + $0xc8] sm:$0xff] }
 0x217   : > { %1139 = vbcast.lane.b32.xlu1 %v1137_v49, 256  ;;  %1195 = vbcast.lane.b32.xlu0 %v1193_v37, 256 }
 0x218   : > { %v1276_v53 = vrot.slane %v1275_v50, 2  ;;  %v1270_v54 = vrot.slane %v1269_v46, 2  ;;  %v1316_v55 = vrot.slane %v1212_v51, 4  ;;  %v1280_v56 = vrot.slane %v1206_v52, 4 }
 0x219   : > { %v825_v60 = vpop.permute.xlu1 %824  ;;  %v874_v63 = vpop.permute.xlu0 %873 }
 0x21a   : > { %v1277_v33 = vadd.f32 %v1276_v53, %v1275_v50  ;;  %v1271_v1 = vadd.f32 %v1270_v54, %v1269_v46  ;;  %v1317_v3 = vadd.f32 %v1316_v55, %v1212_v51  ;;  %v1281_v61 = vadd.f32 %v1280_v56, %v1206_v52 }
 0x21b   : > { %v1213_v6 = vmul.f32 %v825_v60, %v701_v57  ;;  %v1220_v9 = vmul.f32 %v874_v63, %v708_v58  ;;  %1146 = vbcast.lane.b32.xlu1 %v1144_v0, 256 }
 0x21c   : > { %v1278_v11 = vrot.slane %v1277_v33, 1  ;;  %v1318_v12 = vrot.slane %v1317_v3, 2  ;;  %v1282_v13 = vrot.slane %v1281_v61, 2  ;;  %v1272_v21 = vrot.slane %v1271_v1, 1 }
 0x21d   : > { %v1322_v19 = vrot.slane %v1213_v6, 4  ;;  %v1364_v17 = vrot.slane %v1220_v9, 4  ;;  %v832_v20 = vpop.permute.xlu1 %831  ;;  %v783_v62 = vpop.permute.xlu0 %782 }
 0x21e   : > { %v1214_v7 = vmul.f32 %v832_v20, %v702_v15  ;;  %v1207_v25 = vmul.f32 %v783_v62, %v695_v16  ;;  %v3298_v27 = vadd.f32 %v1278_v11, %v1277_v33  ;;  %v1319_v18 = vadd.f32 %v1318_v12, %v1317_v3  ;;  %v588_v3 = vld [vmem:[%s3066_s13] sm:$0xff] }
 0x21f   : > { %v1323_v22 = vadd.f32 %v1322_v19, %v1213_v6  ;;  %v1365_v24 = vadd.f32 %v1364_v17, %v1220_v9  ;;  %1202 = vbcast.lane.b32.xlu1 %v1200_v59, 256  ;;  %v1283_v28 = vadd.f32 %v1282_v13, %v1281_v61  ;;  %v3301_v36 = vadd.f32 %v1272_v21, %v1271_v1  ;;  %v716_v1 = vld [vmem:[%s3073_s26 + $0xc0] sm:$0xff] }
 0x220   : > { %v1328_v32 = vrot.slane %v1214_v7, 4  ;;  %v1286_v30 = vrot.slane %v1207_v25, 4  ;;  %v1653_v44 = vmul.f32 %v3298_v27, %v3298_v27  ;;  %v1320_v45 = vrot.slane %v1319_v18, 1  ;;  %v704_v20 = vld [vmem:[%s3073_s26 + $0x60] sm:$0xff] }
 0x221   : > { %v1324_v14 = vrot.slane %v1323_v22, 2  ;;  %v1366_v31 = vrot.slane %v1365_v24, 2  ;;  %v881_v35 = vpop.permute.xlu1 %880  ;;  %v888_v10 = vpop.permute.xlu0 %887  ;;  %4069 = vst [vmem:[#allocation7_spill] sm:$0xff] %v3301_v36  ;;  %v1284_v34 = vrot.slane %v1283_v28, 1  ;;  %v1652_v55 = vmul.f32 %v3301_v36, %v3301_v36 }
 0x222   : > { %v1221_v38 = vmul.f32 %v881_v35, %v709_v26  ;;  %v1329_v23 = vadd.f32 %v1328_v32, %v1214_v7  ;;  %v1287_v41 = vadd.f32 %v1286_v30, %v1207_v25  ;;  %v1222_v29 = vmul.f32 %v888_v10, %v710_v4 }
 0x223   : > { %v1325_v39 = vadd.f32 %v1324_v14, %v1323_v22  ;;  %v1367_v40 = vadd.f32 %v1366_v31, %v1365_v24  ;;  %v3313_v61 = vadd.f32 %v1320_v45, %v1319_v18  ;;  %v3315_v6 = vadd.f32 %v1284_v34, %v1283_v28  ;;  %v696_v18 = vld [vmem:[%s3073_s26 + $0x20] sm:$0xff]  ;;  %v718_v28 = vld [vmem:[%s3073_s26 + $0xd0] sm:$0xff] }
 0x224   : > { %v1370_v47 = vrot.slane %v1221_v38, 4  ;;  %v1330_v49 = vrot.slane %v1329_v23, 2  ;;  %v1288_v37 = vrot.slane %v1287_v41, 2  ;;  %v1376_v52 = vrot.slane %v1222_v29, 4 }
 0x225   : > { %v1326_v48 = vrot.slane %v1325_v39, 1  ;;  %v839_v50 = vpop.permute.xlu1 %838  ;;  %v937_v46 = vpop.permute.xlu0 %936  ;;  %v1368_v57 = vrot.slane %v1367_v40, 1  ;;  %4071 = vst [vmem:[#allocation9_spill] sm:$0xff] %v3313_v61  ;;  %v3319_v62 = vsel %vm1780_vm2, %v1653_v44, %v1652_v55  ;;  %v597_v22 = vmul.f32 %v588_v3, %v588_v3 }
 0x226   : > { %v1371_v51 = vadd.f32 %v1370_v47, %v1221_v38  ;;  %v1215_v53 = vmul.f32 %v839_v50, %v703_v42  ;;  %v1229_v54 = vmul.f32 %v937_v46, %v717_v43  ;;  %v1331_v58 = vadd.f32 %v1330_v49, %v1329_v23  ;;  %v711_v50 = vld [vmem:[%s3073_s26 + $0x98] sm:$0xff] }
 0x227   : > { %v3309_v56 = vadd.f32 %v1326_v48, %v1325_v39  ;;  %v1377_v63 = vadd.f32 %v1376_v52, %v1222_v29  ;;  %v1289_v11 = vadd.f32 %v1288_v37, %v1287_v41  ;;  %v3321_v59 = vadd.f32 %v1368_v57, %v1367_v40 }
 0x228   : > { %v1372_v60 = vrot.slane %v1371_v51, 2  ;;  %v1334_v0 = vrot.slane %v1215_v53, 4  ;;  %v1418_v33 = vrot.slane %v1229_v54, 4  ;;  %v1332_v9 = vrot.slane %v1331_v58, 1 }
 0x229   : > { %4070 = vst [vmem:[#allocation8_spill] sm:$0xff] %v3309_v56  ;;  %v930_v12 = vpop.permute.xlu1 %929  ;;  %v846_v13 = vpop.permute.xlu0 %845  ;;  %v1378_v16 = vrot.slane %v1377_v63, 2  ;;  %4072 = vst [vmem:[#allocation10_spill] sm:$0xff] %v3321_v59  ;;  %v1661_v24 = vmul.f32 %v3309_v56, %v3309_v56  ;;  %v1660_v14 = vmul.f32 %v3313_v61, %v3313_v61  ;;  %v3331_v31 = vmul.f32 %v3315_v6, %v3315_v6  ;;  %v707_v61 = vld [vmem:[%s3073_s26 + $0x78] sm:$0xff] }
 0x22a   : > { %v1373_v15 = vadd.f32 %v1372_v60, %v1371_v51  ;;  %v1335_v19 = vadd.f32 %v1334_v0, %v1215_v53  ;;  %v1419_v17 = vadd.f32 %v1418_v33, %v1229_v54  ;;  %v1228_v21 = vmul.f32 %v930_v12, %v716_v1  ;;  %v725_v51 = vld [vmem:[%s3073_s26 + $0x108] sm:$0xff]  ;;  %v724_v33 = vld [vmem:[%s3073_s26 + $0x100] sm:$0xff] }
 0x22b   : > { %v1216_v30 = vmul.f32 %v846_v13, %v704_v20  ;;  %v3333_v10 = vadd.f32 %v1332_v9, %v1331_v58  ;;  %v1290_v38 = vrot.slane %v1289_v11, 1  ;;  %v1379_v39 = vadd.f32 %v1378_v16, %v1377_v63  ;;  %v705_v1 = vld [vmem:[%s3073_s26 + $0x68] sm:$0xff] }
 0x22c   : > { %v1374_v7 = vrot.slane %v1373_v15, 1  ;;  %v1336_v25 = vrot.slane %v1335_v19, 2  ;;  %v1420_v26 = vrot.slane %v1419_v17, 2  ;;  %v1412_v32 = vrot.slane %v1228_v21, 4 }
 0x22d   : > { %v790_v35 = vpop.permute.xlu1 %789  ;;  %v944_v4 = vpop.permute.xlu0 %943  ;;  %4073 = vst [vmem:[#allocation11_spill] sm:$0xff] %v3333_v10  ;;  %v1340_v41 = vrot.slane %v1216_v30, 4  ;;  %v3336_v44 = vsel %vm1780_vm2, %v1661_v24, %v1660_v14  ;;  %v1668_v45 = vmul.f32 %v3321_v59, %v3321_v59  ;;  %v3346_v53 = vmul.f32 %v3333_v10, %v3333_v10 }
 0x22e   : > { %v1337_v40 = vadd.f32 %v1336_v25, %v1335_v19  ;;  %v1413_v23 = vadd.f32 %v1412_v32, %v1228_v21  ;;  %v1208_v42 = vmul.f32 %v790_v35, %v696_v18  ;;  %v1230_v43 = vmul.f32 %v944_v4, %v718_v28 }
 0x22f   : > { %v3340_v47 = vadd.f32 %v1374_v7, %v1373_v15  ;;  %v1421_v29 = vadd.f32 %v1420_v26, %v1419_v17  ;;  %v1341_v48 = vadd.f32 %v1340_v41, %v1216_v30  ;;  %v3348_v54 = vadd.f32 %v1290_v38, %v1289_v11 }
 0x230   : > { %v1414_v34 = vrot.slane %v1413_v23, 2  ;;  %v1292_v49 = vrot.slane %v1208_v42, 4  ;;  %v1424_v37 = vrot.slane %v1230_v43, 4  ;;  %v1380_v55 = vrot.slane %v1379_v39, 1 }
 0x231   : > { %4074 = vst [vmem:[#allocation12_spill] sm:$0xff] %v3340_v47  ;;  %v895_v46 = vpop.permute.xlu1 %894  ;;  %v993_v52 = vpop.permute.xlu0 %992  ;;  %v1338_v57 = vrot.slane %v1337_v40, 1  ;;  %v1342_v60 = vrot.slane %v1341_v48, 2  ;;  %v1669_v3 = vmul.f32 %v3340_v47, %v3340_v47  ;;  %v1422_v9 = vrot.slane %v1421_v29, 1 }
 0x232   : > { %v1415_v58 = vadd.f32 %v1414_v34, %v1413_v23  ;;  %v1293_v63 = vadd.f32 %v1292_v49, %v1208_v42  ;;  %v1425_v0 = vadd.f32 %v1424_v37, %v1230_v43  ;;  %v1223_v12 = vmul.f32 %v895_v46, %v711_v50  ;;  %v697_v49 = vld [vmem:[%s3073_s26 + $0x28] sm:$0xff]  ;;  %v719_v37 = vld [vmem:[%s3073_s26 + $0xd8] sm:$0xff] }
 0x233   : > { %v1237_v13 = vmul.f32 %v993_v52, %v725_v51  ;;  %v1343_v16 = vadd.f32 %v1342_v60, %v1341_v48  ;;  %v3354_v26 = vadd.f32 %v1380_v55, %v1379_v39  ;;  %v3356_v18 = vadd.f32 %v1338_v57, %v1337_v40  ;;  %v712_v60 = vld [vmem:[%s3073_s26 + $0xa0] sm:$0xff] }
 0x234   : > { %v1416_v15 = vrot.slane %v1415_v58, 1  ;;  %v1294_v19 = vrot.slane %v1293_v63, 2  ;;  %v1426_v17 = vrot.slane %v1425_v0, 2  ;;  %v1382_v21 = vrot.slane %v1223_v12, 4 }
 0x235   : > { %v986_v11 = vpop.permute.xlu1 %985  ;;  %v853_v20 = vpop.permute.xlu0 %852  ;;  %v1466_v24 = vrot.slane %v1237_v13, 4  ;;  %4075 = vst [vmem:[#allocation13_spill] sm:$0xff] %v3354_v26  ;;  %4076 = vst [vmem:[#allocation14_spill] sm:$0xff] %v3356_v18  ;;  %v1344_v14 = vrot.slane %v1343_v16, 1  ;;  %v3362_v38 = vmul.f32 %v3348_v54, %v3348_v54  ;;  %v3364_v23 = vadd.f32 %v1422_v9, %v1421_v29 }
 0x236   : > { %v1236_v7 = vmul.f32 %v986_v11, %v724_v33  ;;  %v1217_v25 = vmul.f32 %v853_v20, %v705_v1  ;;  %598 = vadd.xlane.f32.xlu0 %v597_v22  ;;  %v3358_v28 = vadd.f32 %v1416_v15, %v1415_v58  ;;  %v1383_v32 = vadd.f32 %v1382_v21, %v1223_v12 }
 0x237   : > { %v1467_v30 = vadd.f32 %v1466_v24, %v1237_v13  ;;  %4078 = vst [vmem:[#allocation16_spill] sm:$0xff] %v3364_v23  ;;  %v1295_v22 = vadd.f32 %v1294_v19, %v1293_v63  ;;  %v1427_v39 = vadd.f32 %v1426_v17, %v1425_v0  ;;  %v3369_v50 = vsel %vm1780_vm2, %v1669_v3, %v1668_v45  ;;  %v732_v63 = vld [vmem:[%s3073_s26 + $0x140] sm:$0xff] }
 0x238   : > { %4077 = vst [vmem:[#allocation15_spill] sm:$0xff] %v3358_v28  ;;  %v1460_v35 = vrot.slane %v1236_v7, 4  ;;  %v1346_v4 = vrot.slane %v1217_v25, 4  ;;  %v1384_v42 = vrot.slane %v1383_v32, 2  ;;  %v3373_v46 = vmul.f32 %v3354_v26, %v3354_v26 }
 0x239   : > { %v797_v41 = vpop.permute.xlu1 %796  ;;  %v951_v40 = vpop.permute.xlu0 %950  ;;  %v1468_v43 = vrot.slane %v1467_v30, 2  ;;  %v3377_v29 = vmul.f32 %v3356_v18, %v3356_v18  ;;  %v1676_v51 = vmul.f32 %v3358_v28, %v3358_v28  ;;  %v3381_v52 = vadd.f32 %v1344_v14, %v1343_v16 }
 0x23a   : > { %v1461_v34 = vadd.f32 %v1460_v35, %v1236_v7  ;;  %v1347_v48 = vadd.f32 %v1346_v4, %v1217_v25  ;;  %v1677_v45 = vmul.f32 %v3364_v23, %v3364_v23  ;;  %v1296_v0 = vrot.slane %v1295_v22, 1  ;;  %v726_v4 = vld [vmem:[%s3073_s26 + $0x110] sm:$0xff] }
 0x23b   : > { %4079 = vst [vmem:[#allocation17_spill] sm:$0xff] %v3381_v52  ;;  %v1469_v55 = vadd.f32 %v1468_v43, %v1467_v30  ;;  %v1209_v33 = vmul.f32 %v797_v41, %v697_v49  ;;  %v1231_v1 = vmul.f32 %v951_v40, %v719_v37  ;;  %v1428_v12 = vrot.slane %v1427_v39, 1  ;;  %v698_v40 = vld [vmem:[%s3073_s26 + $0x30] sm:$0xff] }
 0x23c   : > { %v1462_v57 = vrot.slane %v1461_v34, 2  ;;  %v1348_v58 = vrot.slane %v1347_v48, 2  ;;  %v1385_v13 = vadd.f32 %v1384_v42, %v1383_v32  ;;  %v3388_v21 = vsel %vm1780_vm2, %v1677_v45, %v1676_v51  ;;  %v734_v23 = vld [vmem:[%s3073_s26 + $0x150] sm:$0xff] }
 0x23d   : > { %v902_v3 = vpop.permute.xlu1 %901  ;;  %v1042_v9 = vpop.permute.xlu0 %1041  ;;  %v1298_v19 = vrot.slane %v1209_v33, 4  ;;  %v1430_v17 = vrot.slane %v1231_v1, 4  ;;  %v3392_v24 = vmul.f32 %v3381_v52, %v3381_v52  ;;  %v1470_v7 = vrot.slane %v1469_v55, 1 }
 0x23e   : > { %v1463_v15 = vadd.f32 %v1462_v57, %v1461_v34  ;;  %v1349_v16 = vadd.f32 %v1348_v58, %v1347_v48  ;;  %v1224_v11 = vmul.f32 %v902_v3, %v712_v60  ;;  %v1244_v20 = vmul.f32 %v1042_v9, %v732_v63  ;;  %v733_v60 = vld [vmem:[%s3073_s26 + $0x148] sm:$0xff] }
 0x23f   : > { %v1299_v14 = vadd.f32 %v1298_v19, %v1209_v33  ;;  %v1431_v30 = vadd.f32 %v1430_v17, %v1231_v1  ;;  %v3396_v43 = vadd.f32 %v1296_v0, %v1295_v22  ;;  %v1386_v34 = vrot.slane %v1385_v13, 1 }
 0x240   : > { %v1464_v25 = vrot.slane %v1463_v15, 1  ;;  %v1388_v32 = vrot.slane %v1224_v11, 4  ;;  %v1508_v35 = vrot.slane %v1244_v20, 4  ;;  %v1350_v49 = vrot.slane %v1349_v16, 1 }
 0x241   : > { %v1000_v41 = vpop.permute.xlu1 %999  ;;  %v804_v42 = vpop.permute.xlu0 %803  ;;  %v1300_v37 = vrot.slane %v1299_v14, 2  ;;  %v1432_v51 = vrot.slane %v1431_v30, 2  ;;  %v3401_v63 = vadd.f32 %v1428_v12, %v1427_v39  ;;  %v3403_v45 = vadd.f32 %v1470_v7, %v1469_v55 }
 0x242   : > { %v3398_v48 = vadd.f32 %v1464_v25, %v1463_v15  ;;  %v1389_v57 = vadd.f32 %v1388_v32, %v1224_v11  ;;  %v1509_v58 = vadd.f32 %v1508_v35, %v1244_v20  ;;  %v1238_v33 = vmul.f32 %v1000_v41, %v726_v4  ;;  %v713_v15 = vld [vmem:[%s3073_s26 + $0xa8] sm:$0xff] }
 0x243   : > { %4081 = vst [vmem:[#allocation19_spill] sm:$0xff] %v3401_v63  ;;  %4082 = vst [vmem:[#allocation20_spill] sm:$0xff] %v3403_v45  ;;  %v1210_v1 = vmul.f32 %v804_v42, %v698_v40  ;;  %v1301_v3 = vadd.f32 %v1300_v37, %v1299_v14  ;;  %v1433_v9 = vadd.f32 %v1432_v51, %v1431_v30  ;;  %v727_v37 = vld [vmem:[%s3073_s26 + $0x118] sm:$0xff] }
 0x244   : > { %4080 = vst [vmem:[#allocation18_spill] sm:$0xff] %v3398_v48  ;;  %v1390_v22 = vrot.slane %v1389_v57, 2  ;;  %v1510_v0 = vrot.slane %v1509_v58, 2  ;;  %v3406_v25 = vadd.f32 %v1386_v34, %v1385_v13  ;;  %v1472_v2 = vrot.slane %v1238_v33, 4 }
 0x245   : > { %v1049_v19 = vpop.permute.xlu1 %1048  ;;  %v909_v17 = vpop.permute.xlu0 %908  ;;  %v1304_v28 = vrot.slane %v1210_v1, 4  ;;  %v1684_v39 = vmul.f32 %v3398_v48, %v3398_v48  ;;  %v3410_v12 = vadd.f32 %v1350_v49, %v1349_v16  ;;  %v1302_v55 = vrot.slane %v1301_v3, 1  ;;  %v706_v49 = vld [vmem:[%s3073_s26 + $0x70] sm:$0xff] }
 0x246   : > { %4083 = vst [vmem:[#allocation21_spill] sm:$0xff] %v3406_v25  ;;  %v1245_v11 = vmul.f32 %v1049_v19, %v733_v60  ;;  %v1434_v20 = vrot.slane %v1433_v9, 1  ;;  %v1473_v7 = vadd.f32 %v1472_v2, %v1238_v33  ;;  %v1225_v32 = vmul.f32 %v909_v17, %v713_v15  ;;  %v740_v19 = vld [vmem:[%s3073_s26 + $0x180] sm:$0xff] }
 0x247   : > { %4084 = vst [vmem:[#allocation22_spill] sm:$0xff] %v3410_v12  ;;  %v1305_v14 = vadd.f32 %v1304_v28, %v1210_v1  ;;  %v3414_v13 = vmul.f32 %v3396_v43, %v3396_v43  ;;  %v1685_v35 = vmul.f32 %v3403_v45, %v3403_v45  ;;  %v1391_v4 = vadd.f32 %v1390_v22, %v1389_v57 }
 0x248   : > { %v1514_v30 = vrot.slane %v1245_v11, 4  ;;  %v1511_v41 = vadd.f32 %v1510_v0, %v1509_v58  ;;  %v3418_v42 = vadd.f32 %v1302_v55, %v1301_v3  ;;  %v1474_v34 = vrot.slane %v1473_v7, 2  ;;  %v720_v0 = vld [vmem:[%s3073_s26 + $0xe0] sm:$0xff] }
 0x249   : > { %v860_v40 = vpop.permute.xlu1 %859  ;;  %v1007_v16 = vpop.permute.xlu0 %1006  ;;  %v1394_v28 = vrot.slane %v1225_v32, 4  ;;  %v3424_v51 = vmul.f32 %v3401_v63, %v3401_v63  ;;  %v3428_v60 = vmul.f32 %v3406_v25, %v3406_v25  ;;  %v3431_v57 = vsel %vm1780_vm2, %v1685_v35, %v1684_v39 }
 0x24a   : > { %v1515_v2 = vadd.f32 %v1514_v30, %v1245_v11  ;;  %v3435_v58 = vmul.f32 %v3410_v12, %v3410_v12  ;;  %v3437_v33 = vadd.f32 %v1434_v20, %v1433_v9  ;;  %v1306_v1 = vrot.slane %v1305_v14, 2 }
 0x24b   : > { %v1395_v22 = vadd.f32 %v1394_v28, %v1225_v32  ;;  %v1392_v15 = vrot.slane %v1391_v4, 1  ;;  %v1512_v17 = vrot.slane %v1511_v41, 1  ;;  %v1218_v11 = vmul.f32 %v860_v40, %v706_v49 }
 0x24c   : > { %4085 = vst [vmem:[#allocation23_spill] sm:$0xff] %v3437_v33  ;;  %v1516_v3 = vrot.slane %v1515_v2, 2  ;;  %v1239_v55 = vmul.f32 %v1007_v16, %v727_v37  ;;  %v3443_v39 = vmul.f32 %v3418_v42, %v3418_v42  ;;  %v1475_v35 = vadd.f32 %v1474_v34, %v1473_v7  ;;  %v699_v34 = vld [vmem:[%s3073_s26 + $0x38] sm:$0xff] }
 0x24d   : > { %v958_v30 = vpop.permute.xlu1 %957  ;;  %v1098_v48 = vpop.permute.xlu0 %1097  ;;  %v1396_v9 = vrot.slane %v1395_v22, 2  ;;  %v1352_v20 = vrot.slane %v1218_v11, 4  ;;  %v3448_v59 = vmul.f32 %v3437_v33, %v3437_v33  ;;  %v1307_v40 = vadd.f32 %v1306_v1, %v1305_v14 }
 0x24e   : > { %v1517_v45 = vadd.f32 %v1516_v3, %v1515_v2  ;;  %v1478_v63 = vrot.slane %v1239_v55, 4  ;;  %v1232_v32 = vmul.f32 %v958_v30, %v720_v0  ;;  %v1252_v28 = vmul.f32 %v1098_v48, %v740_v19 }
 0x24f   : > { %v1397_v49 = vadd.f32 %v1396_v9, %v1395_v22  ;;  %v1353_v37 = vadd.f32 %v1352_v20, %v1218_v11  ;;  %v3451_v3 = vadd.f32 %v1392_v15, %v1391_v4  ;;  %v1476_v0 = vrot.slane %v1475_v35, 1  ;;  %v741_v15 = vld [vmem:[%s3073_s26 + $0x188] sm:$0xff] }
 0x250   : > { %v1518_v16 = vrot.slane %v1517_v45, 1  ;;  %v1479_v25 = vadd.f32 %v1478_v63, %v1239_v55  ;;  %v1436_v26 = vrot.slane %v1232_v32, 4  ;;  %v1556_v47 = vrot.slane %v1252_v28, 4 }
 0x251   : > { %v1056_v7 = vpop.permute.xlu1 %1055  ;;  %v811_v2 = vpop.permute.xlu0 %810  ;;  %4086 = vst [vmem:[#allocation24_spill] sm:$0xff] %v3451_v3  ;;  %v1354_v30 = vrot.slane %v1353_v37, 2  ;;  %v3455_v22 = vadd.f32 %v1512_v17, %v1511_v41  ;;  %v1308_v63 = vrot.slane %v1307_v40, 1  ;;  %v1398_v9 = vrot.slane %v1397_v49, 1 }
 0x252   : > { %v3453_v48 = vadd.f32 %v1518_v16, %v1517_v45  ;;  %v1246_v19 = vmul.f32 %v1056_v7, %v734_v23  ;;  %v1480_v33 = vrot.slane %v1479_v25, 2  ;;  %v1437_v14 = vadd.f32 %v1436_v26, %v1232_v32  ;;  %v714_v45 = vld [vmem:[%s3073_s26 + $0xb0] sm:$0xff] }
 0x253   : > { %v1557_v1 = vadd.f32 %v1556_v47, %v1252_v28  ;;  %4088 = vst [vmem:[#allocation26_spill] sm:$0xff] %v3455_v22  ;;  %v1211_v55 = vmul.f32 %v811_v2, %v699_v34  ;;  %v1355_v20 = vadd.f32 %v1354_v30, %v1353_v37  ;;  %v3461_v23 = vmul.f32 %v3451_v3, %v3451_v3 }
 0x254   : > { %4087 = vst [vmem:[#allocation25_spill] sm:$0xff] %v3453_v48  ;;  %v1520_v11 = vrot.slane %v1246_v19, 4  ;;  %v1438_v12 = vrot.slane %v1437_v14, 2  ;;  %v1481_v26 = vadd.f32 %v1480_v33, %v1479_v25  ;;  %v3463_v17 = vadd.f32 %v1476_v0, %v1475_v35 }
 0x255   : > { %v1558_v4 = vrot.slane %v1557_v1, 2  ;;  %v1105_v52 = vpop.permute.xlu1 %1104  ;;  %v916_v16 = vpop.permute.xlu0 %915  ;;  %v1310_v41 = vrot.slane %v1211_v55, 4  ;;  %v1693_v32 = vmul.f32 %v3453_v48, %v3453_v48  ;;  %v1692_v3 = vmul.f32 %v3455_v22, %v3455_v22 }
 0x256   : > { %v1521_v47 = vadd.f32 %v1520_v11, %v1246_v19  ;;  %4089 = vst [vmem:[#allocation27_spill] sm:$0xff] %v3463_v17  ;;  %v1439_v28 = vadd.f32 %v1438_v12, %v1437_v14  ;;  %v1253_v2 = vmul.f32 %v1105_v52, %v741_v15  ;;  %v1226_v30 = vmul.f32 %v916_v16, %v714_v45  ;;  %v728_v11 = vld [vmem:[%s3073_s26 + $0x120] sm:$0xff]  ;;  %v721_v45 = vld [vmem:[%s3073_s26 + $0xe8] sm:$0xff]  ;;  %v742_v16 = vld [vmem:[%s3073_s26 + $0x190] sm:$0xff] }
 0x257   : > { %v1559_v37 = vadd.f32 %v1558_v4, %v1557_v1  ;;  %v1311_v34 = vadd.f32 %v1310_v41, %v1211_v55  ;;  %v3470_v18 = vadd.f32 %v1308_v63, %v1307_v40  ;;  %v3472_v25 = vadd.f32 %v1398_v9, %v1397_v49 }
 0x258   : > { %v1522_v7 = vrot.slane %v1521_v47, 2  ;;  %v1356_v33 = vrot.slane %v1355_v20, 1  ;;  %v1482_v12 = vrot.slane %v1481_v26, 1  ;;  %v1562_v14 = vrot.slane %v1253_v2, 4 }
 0x259   : > { %4090 = vst [vmem:[#allocation28_spill] sm:$0xff] %v3470_v18  ;;  %4091 = vst [vmem:[#allocation29_spill] sm:$0xff] %v3472_v25  ;;  %v867_v35 = vpop.permute.xlu1 %866  ;;  %v1014_v0 = vpop.permute.xlu0 %1013  ;;  %v1312_v19 = vrot.slane %v1311_v34, 2  ;;  %v1400_v1 = vrot.slane %v1226_v30, 4  ;;  %v3477_v52 = vmul.f32 %v3463_v17, %v3463_v17  ;;  %v3480_v55 = vsel %vm1780_vm2, %v1693_v32, %v1692_v3 }
 0x25a   : > { %v1440_v40 = vrot.slane %v1439_v28, 1  ;;  %v1219_v49 = vmul.f32 %v867_v35, %v707_v61  ;;  %v1560_v63 = vrot.slane %v1559_v37, 1  ;;  %v1523_v9 = vadd.f32 %v1522_v7, %v1521_v47 }
 0x25b   : > { %v1563_v4 = vadd.f32 %v1562_v14, %v1253_v2  ;;  %v1401_v15 = vadd.f32 %v1400_v1, %v1226_v30  ;;  %v3486_v41 = vmul.f32 %v3472_v25, %v3472_v25  ;;  %v3488_v22 = vadd.f32 %v1356_v33, %v1355_v20  ;;  %v735_v1 = vld [vmem:[%s3073_s26 + $0x158] sm:$0xff]  ;;  %v749_v25 = vld [vmem:[%s3073_s26 + $0x1c8] sm:$0xff] }
 0x25c   : > { %v1358_v48 = vrot.slane %v1219_v49, 4  ;;  %v1240_v17 = vmul.f32 %v1014_v0, %v728_v11  ;;  %v3490_v10 = vadd.f32 %v1482_v12, %v1481_v26  ;;  %v1313_v61 = vadd.f32 %v1312_v19, %v1311_v34 }
 0x25d   : > { %4092 = vst [vmem:[#allocation30_spill] sm:$0xff] %v3488_v22  ;;  %v965_v3 = vpop.permute.xlu1 %964  ;;  %v1112_v32 = vpop.permute.xlu0 %1111  ;;  %v1564_v47 = vrot.slane %v1563_v4, 2  ;;  %v1402_v7 = vrot.slane %v1401_v15, 2  ;;  %v3494_v56 = vadd.f32 %v1440_v40, %v1439_v28  ;;  %v3496_v20 = vadd.f32 %v1560_v63, %v1559_v37 }
 0x25e   : > { %4093 = vst [vmem:[#allocation31_spill] sm:$0xff] %v3490_v10  ;;  %v1359_v2 = vadd.f32 %v1358_v48, %v1219_v49  ;;  %v1484_v30 = vrot.slane %v1240_v17, 4  ;;  %v1233_v35 = vmul.f32 %v965_v3, %v721_v45  ;;  %v1254_v14 = vmul.f32 %v1112_v32, %v742_v16 }
 0x25f   : > { %4094 = vst [vmem:[#allocation32_spill] sm:$0xff] %v3494_v56  ;;  %4095 = vst [vmem:[#allocation33_spill] sm:$0xff] %v3496_v20  ;;  %v1524_v33 = vrot.slane %v1523_v9, 1  ;;  %v1565_v0 = vadd.f32 %v1564_v47, %v1563_v4  ;;  %v1314_v36 = vrot.slane %v1313_v61, 1  ;;  %v1403_v16 = vadd.f32 %v1402_v7, %v1401_v15 }
 0x260   : > { %v1360_v11 = vrot.slane %v1359_v2, 2  ;;  %v1485_v26 = vadd.f32 %v1484_v30, %v1240_v17  ;;  %v1442_v12 = vrot.slane %v1233_v35, 4  ;;  %v1568_v34 = vrot.slane %v1254_v14, 4 }
 0x261   : > { %v1063_v19 = vpop.permute.xlu1 %1062  ;;  %v1161_v8 = vpop.permute.xlu0 %1160  ;;  %v1566_v48 = vrot.slane %v1565_v0, 1  ;;  %v3502_v32 = vmul.f32 %v3490_v10, %v3490_v10  ;;  %v3506_v7 = vmul.f32 %v3494_v56, %v3494_v56 }
 0x262   : > { %v1247_v49 = vmul.f32 %v1063_v19, %v735_v1  ;;  %v1261_v45 = vmul.f32 %v1161_v8, %v749_v25  ;;  %v1486_v3 = vrot.slane %v1485_v26, 2  ;;  %v1443_v28 = vadd.f32 %v1442_v12, %v1233_v35 }
 0x263   : > { %v1569_v40 = vadd.f32 %v1568_v34, %v1254_v14  ;;  %v3498_v37 = vadd.f32 %v1566_v48, %v1565_v0  ;;  %v1361_v63 = vadd.f32 %v1360_v11, %v1359_v2  ;;  %v3508_v35 = vadd.f32 %v1314_v36, %v1313_v61  ;;  %v748_v34 = vld [vmem:[%s3073_s26 + $0x1c0] sm:$0xff] }
 0x264   : > { %v1526_v17 = vrot.slane %v1247_v49, 4  ;;  %v1610_v4 = vrot.slane %v1261_v45, 4  ;;  %v1487_v47 = vadd.f32 %v1486_v3, %v1485_v26  ;;  %v1444_v8 = vrot.slane %v1443_v28, 2 }
 0x265   : > { %4096 = vst [vmem:[#allocation34_spill] sm:$0xff] %v3498_v37  ;;  %v1570_v25 = vrot.slane %v1569_v40, 2  ;;  %v1154_v30 = vpop.permute.xlu1 %1153  ;;  %v972_v15 = vpop.permute.xlu0 %971  ;;  %4097 = vst [vmem:[#allocation35_spill] sm:$0xff] %v3508_v35  ;;  %v3510_v1 = vadd.f32 %v1524_v33, %v1523_v9  ;;  %v1404_v0 = vrot.slane %v1403_v16, 1  ;;  %v1700_v26 = vmul.f32 %v3496_v20, %v3496_v20 }
 0x266   : > { %v1527_v14 = vadd.f32 %v1526_v17, %v1247_v49  ;;  %v1611_v2 = vadd.f32 %v1610_v4, %v1261_v45  ;;  %v1488_v11 = vrot.slane %v1487_v47, 1  ;;  %v1445_v12 = vadd.f32 %v1444_v8, %v1443_v28  ;;  %v722_v4 = vld [vmem:[%s3073_s26 + $0xf0] sm:$0xff] }
 0x267   : > { %4098 = vst [vmem:[#allocation36_spill] sm:$0xff] %v3510_v1  ;;  %v1701_v19 = vmul.f32 %v3498_v37, %v3498_v37  ;;  %v1362_v48 = vrot.slane %v1361_v63, 1  ;;  %v1571_v3 = vadd.f32 %v1570_v25, %v1569_v40  ;;  %v1658_v61 = vmul.f32 %v3470_v18, %v3470_v18 }
 0x268   : > { %v1528_v10 = vrot.slane %v1527_v14, 2  ;;  %v1612_v36 = vrot.slane %v1611_v2, 2  ;;  %v1783_v9 = vsel %vm1782_vm3, %v3331_v31, %v3319_v62  ;;  %v3522_v45 = vadd.f32 %v1488_v11, %v1487_v47 }
 0x269   : > { %v923_v33 = vpop.permute.xlu1 %922  ;;  %v1070_v49 = vpop.permute.xlu0 %1069  ;;  %v1659_v28 = vmul.f32 %v3508_v35, %v3508_v35  ;;  %v1785_v40 = vsel %vm1784_vm4, %v3362_v38, %v1783_v9  ;;  %v1260_v17 = vmul.f32 %v1154_v30, %v748_v34  ;;  %v3531_v8 = vmul.f32 %v3510_v1, %v3510_v1  ;;  %v715_v38 = vld [vmem:[%s3073_s26 + $0xb8] sm:$0xff]  ;;  %v736_v30 = vld [vmem:[%s3073_s26 + $0x160] sm:$0xff] }
 0x26a   : > { %4099 = vst [vmem:[#allocation37_spill] sm:$0xff] %v3522_v45  ;;  %v3533_v25 = vadd.f32 %v1404_v0, %v1403_v16  ;;  %v1446_v62 = vrot.slane %v1445_v12, 1  ;;  %v1787_v31 = vsel %vm1786_vm5, %v3414_v13, %v1785_v40  ;;  %v3537_v47 = vadd.f32 %v1362_v48, %v1361_v63 }
 0x26b   : > { %v1572_v11 = vrot.slane %v1571_v3, 1  ;;  %v1789_v20 = vsel %vm1788_vm7, %v3443_v39, %v1787_v31  ;;  %v1604_v37 = vrot.slane %v1260_v17, 4  ;;  %v3544_v34 = vsel %vm1780_vm2, %v1701_v19, %v1700_v26 }
 0x26c   : > { %4100 = vst [vmem:[#allocation38_spill] sm:$0xff] %v3537_v47  ;;  %v1529_v16 = vadd.f32 %v1528_v10, %v1527_v14  ;;  %v1791_v0 = vsel %vm1790_vm6, %v1658_v61, %v1789_v20  ;;  %v1234_v9 = vmul.f32 %v972_v15, %v722_v4  ;;  %v3549_v63 = vmul.f32 %v3522_v45, %v3522_v45  ;;  %v729_v14 = vld [vmem:[%s3073_s26 + $0x128] sm:$0xff]  ;;  %v750_v20 = vld [vmem:[%s3073_s26 + $0x1d0] sm:$0xff]  ;;  %v743_v45 = vld [vmem:[%s3073_s26 + $0x198] sm:$0xff] }
 0x26d   : > { %v1021_v1 = vpop.permute.xlu1 %1020  ;;  %v1168_v13 = vpop.permute.xlu0 %1167  ;;  %v3551_v48 = vadd.f32 %v1612_v36, %v1611_v2  ;;  %v1793_v39 = vsel %vm1792_vm8, %v1659_v28, %v1791_v0  ;;  %v1605_v40 = vadd.f32 %v1604_v37, %v1260_v17  ;;  %v3554_v31 = vadd.f32 %v1446_v62, %v1445_v12 }
 0x26e   : > { %1851 = vadd.xlane.f32.xlu0 %v1793_v39  ;;  %v1448_v26 = vrot.slane %v1234_v9, 4  ;;  %v1227_v19 = vmul.f32 %v923_v33, %v715_v38  ;;  %v1248_v10 = vmul.f32 %v1070_v49, %v736_v30  ;;  %v3558_v15 = vadd.f32 %v1572_v11, %v1571_v3 }
 0x26f   : > { %4101 = vst [vmem:[#allocation39_spill] sm:$0xff] %v3554_v31  ;;  %v1606_v61 = vrot.slane %v1605_v40, 2  ;;  %v1666_v4 = vmul.f32 %v3488_v22, %v3488_v22  ;;  %v1667_v2 = vmul.f32 %v3537_v47, %v3537_v47  ;;  %v1795_v12 = vsel %vm1782_vm3, %v3346_v53, %v3336_v44  ;;  %v723_v47 = vld [vmem:[%s3073_s26 + $0xf8] sm:$0xff] }
 0x270   : > { %4102 = vst [vmem:[#allocation40_spill] sm:$0xff] %v3558_v15  ;;  %v1449_v36 = vadd.f32 %v1448_v26, %v1234_v9  ;;  %v1406_v28 = vrot.slane %v1227_v19, 4  ;;  %v1532_v37 = vrot.slane %v1248_v10, 4  ;;  %v1796_v3 = vsel %vm1784_vm4, %v3377_v29, %v1795_v12 }
 0x271   : > { %v1119_v33 = vpop.permute.xlu1 %1118  ;;  %v1028_v49 = vpop.permute.xlu0 %1027  ;;  %v1607_v17 = vadd.f32 %v1606_v61, %v1605_v40  ;;  %v1241_v62 = vmul.f32 %v1021_v1, %v729_v14  ;;  %v1262_v11 = vmul.f32 %v1168_v13, %v750_v20  ;;  %v1530_v38 = vrot.slane %v1529_v16, 1  ;;  %v730_v1 = vld [vmem:[%s3073_s26 + $0x130] sm:$0xff] }
 0x272   : > { %v1407_v30 = vadd.f32 %v1406_v28, %v1227_v19  ;;  %v1533_v0 = vadd.f32 %v1532_v37, %v1248_v10  ;;  %v1797_v9 = vsel %vm1786_vm5, %v3392_v24, %v1796_v3  ;;  %v1450_v39 = vrot.slane %v1449_v36, 2 }
 0x273   : > { %v1798_v26 = vsel %vm1788_vm7, %v3435_v58, %v1797_v9  ;;  %v1490_v44 = vrot.slane %v1241_v62, 4  ;;  %v1616_v53 = vrot.slane %v1262_v11, 4  ;;  %v1608_v40 = vrot.slane %v1607_v17, 1 }
 0x274   : > { %v1408_v61 = vrot.slane %v1407_v30, 2  ;;  %v1534_v56 = vrot.slane %v1533_v0, 2  ;;  %v1799_v29 = vsel %vm1790_vm6, %v1666_v4, %v1798_v26  ;;  %v1614_v10 = vrot.slane %v3551_v48, 1 }
 0x275   : > { %v979_v13 = vpop.permute.xlu1 %978  ;;  %v1126_v19 = vpop.permute.xlu0 %1125  ;;  %v1800_v24 = vsel %vm1792_vm8, %v1667_v2, %v1799_v29  ;;  %v1491_v14 = vadd.f32 %v1490_v44, %v1241_v62  ;;  %v1617_v20 = vadd.f32 %v1616_v53, %v1262_v11  ;;  %v3580_v58 = vmul.f32 %v3554_v31, %v3554_v31  ;;  %v744_v53 = vld [vmem:[%s3073_s26 + $0x1a0] sm:$0xff] }
 0x276   : > { %v3582_v28 = vadd.f32 %v1530_v38, %v1529_v16  ;;  %v1535_v37 = vadd.f32 %v1534_v56, %v1533_v0  ;;  %1853 = vadd.xlane.f32.xlu1 %v1800_v24  ;;  %v1255_v4 = vmul.f32 %v1119_v33, %v743_v45  ;;  %v1451_v12 = vadd.f32 %v1450_v39, %v1449_v36  ;;  %v737_v0 = vld [vmem:[%s3073_s26 + $0x168] sm:$0xff]  ;;  %v731_v24 = vld [vmem:[%s3073_s26 + $0x138] sm:$0xff] }
 0x277   : > { %v1492_v3 = vrot.slane %v1491_v14, 2  ;;  %v1618_v9 = vrot.slane %v1617_v20, 2  ;;  %v1242_v26 = vmul.f32 %v1028_v49, %v730_v1  ;;  %v3587_v2 = vmul.f32 %v3558_v15, %v3558_v15 }
 0x278   : > { %4103 = vst [vmem:[#allocation41_spill] sm:$0xff] %v3582_v28  ;;  %v3589_v62 = vadd.f32 %v1608_v40, %v1607_v17  ;;  %v1409_v11 = vadd.f32 %v1408_v61, %v1407_v30  ;;  %v1574_v44 = vrot.slane %v1255_v4, 4  ;;  %v1536_v38 = vrot.slane %v1535_v37, 1 }
 0x279   : > { %v1077_v16 = vpop.permute.xlu1 %1076  ;;  %v1035_v56 = vpop.permute.xlu0 %1034  ;;  %v1493_v45 = vadd.f32 %v1492_v3, %v1491_v14  ;;  %v1619_v36 = vadd.f32 %v1618_v9, %v1617_v20  ;;  %v1496_v33 = vrot.slane %v1242_v26, 4  ;;  %v3595_v49 = vmul.f32 %v3582_v28, %v3582_v28 }
 0x27a   : > { %4104 = vst [vmem:[#allocation42_spill] sm:$0xff] %v3589_v62  ;;  %v3598_v39 = vadd.f32 %v1614_v10, %v3551_v48  ;;  %v1575_v17 = vadd.f32 %v1574_v44, %v1255_v4  ;;  %v1235_v40 = vmul.f32 %v979_v13, %v723_v47  ;;  %v1452_v30 = vrot.slane %v1451_v12, 1 }
 0x27b   : > { %v1494_v61 = vrot.slane %v1493_v45, 1  ;;  %v1497_v29 = vadd.f32 %v1496_v33, %v1242_v26  ;;  %v1256_v1 = vmul.f32 %v1126_v19, %v744_v53  ;;  %v1410_v15 = vrot.slane %v1409_v11, 1 }
 0x27c   : > { %4105 = vst [vmem:[#allocation43_spill] sm:$0xff] %v3598_v39  ;;  %v1576_v31 = vrot.slane %v1575_v17, 2  ;;  %v1454_v14 = vrot.slane %v1235_v40, 4  ;;  %v1249_v20 = vmul.f32 %v1077_v16, %v737_v0  ;;  %v1708_v28 = vmul.f32 %v3589_v62, %v3589_v62 }
 0x27d   : > { %v1175_v3 = vpop.permute.xlu1 %1174  ;;  %v1133_v9 = vpop.permute.xlu0 %1132  ;;  %v3603_v22 = vadd.f32 %v1536_v38, %v1535_v37  ;;  %v1620_v48 = vrot.slane %v1619_v36, 1  ;;  %v1580_v10 = vrot.slane %v1256_v1, 4  ;;  %v1498_v47 = vrot.slane %v1497_v29, 2  ;;  %v751_v38 = vld [vmem:[%s3073_s26 + $0x1d8] sm:$0xff] }
 0x27e   : > { %v1455_v13 = vadd.f32 %v1454_v14, %v1235_v40  ;;  %v1538_v4 = vrot.slane %v1249_v20, 4  ;;  %v1243_v26 = vmul.f32 %v1035_v56, %v731_v24  ;;  %v1709_v19 = vmul.f32 %v3598_v39, %v3598_v39  ;;  %v753_v39 = vld [vmem:[%s3073_s26 + $0x1e8] sm:$0xff] }
 0x27f   : > { %4106 = vst [vmem:[#allocation44_spill] sm:$0xff] %v3603_v22  ;;  %v3607_v44 = vadd.f32 %v1494_v61, %v1493_v45  ;;  %v1577_v53 = vadd.f32 %v1576_v31, %v1575_v17  ;;  %v1581_v16 = vadd.f32 %v1580_v10, %v1256_v1  ;;  %v3609_v33 = vadd.f32 %v1410_v15, %v1409_v11  ;;  %v745_v61 = vld [vmem:[%s3073_s26 + $0x1a8] sm:$0xff] }
 0x280   : > { %v1456_v0 = vrot.slane %v1455_v13, 2  ;;  %v1539_v62 = vadd.f32 %v1538_v4, %v1249_v20  ;;  %v1502_v37 = vrot.slane %v1243_v26, 4  ;;  %v3613_v18 = vsel %vm1780_vm2, %v1709_v19, %v1708_v28 }
 0x281   : > { %4107 = vst [vmem:[#allocation45_spill] sm:$0xff] %v3607_v44  ;;  %4108 = vst [vmem:[#allocation46_spill] sm:$0xff] %v3609_v33  ;;  %v1084_v35 = vpop.permute.xlu1 %1083  ;;  %v3615_v40 = vadd.f32 %v1452_v30, %v1451_v12  ;;  %v3619_v56 = vmul.f32 %v3603_v22, %v3603_v22  ;;  %v3621_v45 = vadd.f32 %v1620_v48, %v1619_v36  ;;  %v1091_v1 = vpop.permute.xlu0 %1090  ;;  %v1578_v28 = vrot.slane %v1577_v53, 1 }
 0x282   : > { %v1499_v31 = vadd.f32 %v1498_v47, %v1497_v29  ;;  %v1457_v17 = vadd.f32 %v1456_v0, %v1455_v13  ;;  %v1540_v15 = vrot.slane %v1539_v62, 2  ;;  %v1503_v11 = vadd.f32 %v1502_v37, %v1243_v26 }
 0x283   : > { %4109 = vst [vmem:[#allocation47_spill] sm:$0xff] %v3621_v45  ;;  %v3626_v24 = vmul.f32 %v3607_v44, %v3607_v44  ;;  %v1582_v12 = vrot.slane %v1581_v16, 2  ;;  %v1263_v30 = vmul.f32 %v1175_v3, %v751_v38  ;;  %v1674_v20 = vmul.f32 %v3533_v25, %v3533_v25  ;;  %v739_v38 = vld [vmem:[%s3073_s26 + $0x178] sm:$0xff] }
 0x284   : > { %v1541_v14 = vadd.f32 %v1540_v15, %v1539_v62  ;;  %v1675_v36 = vmul.f32 %v3609_v33, %v3609_v33  ;;  %v1802_v29 = vsel %vm1782_vm3, %v3373_v46, %v3369_v50  ;;  %v1504_v10 = vrot.slane %v1503_v11, 2  ;;  %v738_v62 = vld [vmem:[%s3073_s26 + $0x170] sm:$0xff] }
 0x285   : > { %v1182_v48 = vpop.permute.xlu1 %1181  ;;  %v1803_v47 = vsel %vm1784_vm4, %v3428_v60, %v1802_v29  ;;  %v1622_v13 = vrot.slane %v1263_v30, 4  ;;  %v1257_v3 = vmul.f32 %v1133_v9, %v745_v61  ;;  %v3640_v4 = vmul.f32 %v3621_v45, %v3621_v45  ;;  %v752_v45 = vld [vmem:[%s3073_s26 + $0x1e0] sm:$0xff]  ;;  %v1189_v22 = vpop.permute.xlu0 %1188 }
 0x286   : > { %v1500_v26 = vrot.slane %v1499_v31, 1  ;;  %v1458_v19 = vrot.slane %v1457_v17, 1  ;;  %v1804_v0 = vsel %vm1786_vm5, %v3461_v23, %v1803_v47  ;;  %v3644_v50 = vadd.f32 %v1578_v28, %v1577_v53 }
 0x287   : > { %v1805_v46 = vsel %vm1788_vm7, %v3486_v41, %v1804_v0  ;;  %v1623_v60 = vadd.f32 %v1622_v13, %v1263_v30  ;;  %v1586_v37 = vrot.slane %v1257_v3, 4  ;;  %v1583_v9 = vadd.f32 %v1582_v12, %v1581_v16 }
 0x288   : > { %v1542_v15 = vrot.slane %v1541_v14, 1  ;;  %v1806_v61 = vsel %vm1790_vm6, %v1674_v20, %v1805_v46  ;;  %v1250_v29 = vmul.f32 %v1084_v35, %v738_v62  ;;  %v1505_v44 = vadd.f32 %v1504_v10, %v1503_v11  ;;  %v746_v62 = vld [vmem:[%s3073_s26 + $0x1b0] sm:$0xff] }
 0x289   : > { %v1807_v23 = vsel %vm1792_vm8, %v1675_v36, %v1806_v61  ;;  %v1624_v53 = vrot.slane %v1623_v60, 2  ;;  %v1587_v28 = vadd.f32 %v1586_v37, %v1257_v3  ;;  %v1140_v47 = vpop.permute.xlu1 %1139  ;;  %v3653_v33 = vadd.f32 %v1500_v26, %v1499_v31 }
 0x28a   : > { %v3655_v41 = vadd.f32 %v1458_v19, %v1457_v17  ;;  %1855 = vadd.xlane.f32.xlu0 %v1807_v23  ;;  %v1544_v16 = vrot.slane %v1250_v29, 4  ;;  %v1251_v12 = vmul.f32 %v1091_v1, %v739_v38  ;;  %v1264_v35 = vmul.f32 %v1182_v48, %v752_v45 }
 0x28b   : > { %v1625_v30 = vadd.f32 %v1624_v53, %v1623_v60  ;;  %v1588_v20 = vrot.slane %v1587_v28, 2  ;;  %v1265_v13 = vmul.f32 %v1189_v22, %v753_v39  ;;  %v1584_v0 = vrot.slane %v1583_v9, 1 }
 0x28c   : > { %v3658_v46 = vadd.f32 %v1542_v15, %v1541_v14  ;;  %v1545_v11 = vadd.f32 %v1544_v16, %v1250_v29  ;;  %v1550_v36 = vrot.slane %v1251_v12, 4  ;;  %v1506_v10 = vrot.slane %v1505_v44, 1 }
 0x28d   : > { %v1626_v3 = vrot.slane %v1625_v30, 1  ;;  %v1628_v37 = vrot.slane %v1264_v35, 4  ;;  %v1634_v31 = vrot.slane %v1265_v13, 4  ;;  %v1682_v19 = vmul.f32 %v3615_v40, %v3615_v40  ;;  %v1147_v14 = vpop.permute.xlu1 %1146 }
 0x28e   : > { %v1546_v26 = vrot.slane %v1545_v11, 2  ;;  %v1551_v17 = vadd.f32 %v1550_v36, %v1251_v12  ;;  %v1258_v1 = vmul.f32 %v1140_v47, %v746_v62  ;;  %v3662_v60 = vadd.f32 %v1588_v20, %v1587_v28 }
 0x28f   : > { %v1629_v45 = vadd.f32 %v1628_v37, %v1264_v35  ;;  %v1635_v22 = vadd.f32 %v1634_v31, %v1265_v13  ;;  %v1683_v39 = vmul.f32 %v3655_v41, %v3655_v41  ;;  %v1809_v15 = vsel %vm1782_vm3, %v3424_v51, %v3388_v21  ;;  %v754_v35 = vld [vmem:[%s3073_s26 + $0x1f0] sm:$0xff]  ;;  %v1196_v13 = vpop.permute.xlu0 %1195 }
 0x290   : > { %v1547_v48 = vadd.f32 %v1546_v26, %v1545_v11  ;;  %v1552_v38 = vrot.slane %v1551_v17, 2  ;;  %v1592_v61 = vrot.slane %v1258_v1, 4  ;;  %v3669_v29 = vadd.f32 %v1626_v3, %v1625_v30 }
 0x291   : > { %v1630_v23 = vrot.slane %v1629_v45, 2  ;;  %v1636_v53 = vrot.slane %v1635_v22, 2  ;;  %v1810_v28 = vsel %vm1784_vm4, %v3448_v59, %v1809_v15  ;;  %v3678_v21 = vmul.f32 %v3644_v50, %v3644_v50 }
 0x292   : > { %v1548_v47 = vrot.slane %v1547_v48, 1  ;;  %v1553_v16 = vadd.f32 %v1552_v38, %v1551_v17  ;;  %v1811_v12 = vsel %vm1786_vm5, %v3506_v7, %v1810_v28  ;;  %v1593_v20 = vadd.f32 %v1592_v61, %v1258_v1  ;;  %v747_v17 = vld [vmem:[%s3073_s26 + $0x1b8] sm:$0xff] }
 0x293   : > { %v3680_v51 = vadd.f32 %v1584_v0, %v1583_v9  ;;  %v1631_v30 = vadd.f32 %v1630_v23, %v1629_v45  ;;  %v1812_v59 = vsel %vm1788_vm7, %v3580_v58, %v1811_v12  ;;  %v1697_v62 = vmul.f32 %v3658_v46, %v3658_v46  ;;  %v755_v9 = vld [vmem:[%s3073_s26 + $0x1f8] sm:$0xff]  ;;  %v1203_v0 = vpop.permute.xlu1 %1202 }
 0x294   : > { %v3686_v11 = vadd.f32 %v1506_v10, %v1505_v44  ;;  %v1813_v7 = vsel %vm1790_vm6, %v1682_v19, %v1812_v59  ;;  %v1594_v36 = vrot.slane %v1593_v20, 2  ;;  %v1554_v3 = vrot.slane %v1553_v16, 1 }
 0x295   : > { %v1637_v37 = vadd.f32 %v1636_v53, %v1635_v22  ;;  %v1814_v31 = vsel %vm1792_vm8, %v1683_v39, %v1813_v7  ;;  %v1266_v26 = vmul.f32 %v1196_v13, %v754_v35  ;;  %v1711_v1 = vmul.f32 %v3669_v29, %v3669_v29 }
 0x296   : > { %v1590_v58 = vrot.slane %v3662_v60, 1  ;;  %v3695_v45 = vadd.f32 %v1548_v47, %v1547_v48  ;;  %v1632_v44 = vrot.slane %v1631_v30, 1  ;;  %1857 = vadd.xlane.f32.xlu0 %v1814_v31  ;;  %v1595_v10 = vadd.f32 %v1594_v36, %v1593_v20 }
 0x297   : > { %v1640_v19 = vrot.slane %v1266_v26, 4  ;;  %v1690_v22 = vmul.f32 %v3653_v33, %v3653_v33  ;;  %v1816_v39 = vsel %vm1782_vm3, %v3477_v52, %v3431_v57  ;;  %v1691_v38 = vmul.f32 %v3686_v11, %v3686_v11 }
 0x298   : > { %v1817_v15 = vsel %vm1784_vm4, %v3502_v32, %v1816_v39  ;;  %v1259_v61 = vmul.f32 %v1147_v14, %v747_v17  ;;  %v1267_v48 = vmul.f32 %v1203_v0, %v755_v9  ;;  %v3706_v23 = vadd.f32 %v1554_v3, %v1553_v16 }
 0x299   : > { %v1638_v53 = vrot.slane %v1637_v37, 1  ;;  %v1641_v28 = vadd.f32 %v1640_v19, %v1266_v26  ;;  %v1818_v47 = vsel %vm1786_vm5, %v3549_v63, %v1817_v15  ;;  %v3710_v12 = vadd.f32 %v1632_v44, %v1631_v30 }
 0x29a   : > { %v1819_v57 = vsel %vm1788_vm7, %v3626_v24, %v1818_v47  ;;  %v1598_v52 = vrot.slane %v1259_v61, 4  ;;  %v1646_v20 = vrot.slane %v1267_v48, 4  ;;  %v1596_v35 = vrot.slane %v1595_v10, 1 }
 0x29b   : > { %v1642_v13 = vrot.slane %v1641_v28, 2  ;;  %v1820_v32 = vsel %vm1790_vm6, %v1690_v22, %v1819_v57  ;;  %v1698_v14 = vmul.f32 %v3695_v45, %v3695_v45  ;;  %v1823_v63 = vsel %vm1782_vm3, %v3531_v8, %v3480_v55 }
 0x29c   : > { %v1821_v16 = vsel %vm1792_vm8, %v1691_v38, %v1820_v32  ;;  %v1599_v59 = vadd.f32 %v1598_v52, %v1259_v61  ;;  %v1647_v7 = vadd.f32 %v1646_v20, %v1267_v48  ;;  %v3722_v30 = vadd.f32 %v1590_v58, %v3662_v60  ;;  %v2757_v32 = vld [vmem:[%s3075_s27 + $0x8] sm:$0xff] }
 0x29d   : > { %v1643_v24 = vadd.f32 %v1642_v13, %v1641_v28  ;;  %1859 = vadd.xlane.f32.xlu1 %v1821_v16  ;;  %v1699_v36 = vmul.f32 %v3706_v23, %v3706_v23  ;;  %v1824_v3 = vsel %vm1784_vm4, %v3595_v49, %v1823_v63  ;;  %v3728_v31 = vadd.f32 %v1638_v53, %v1637_v37  ;;  %v2758_v16 = vld [vmem:[%s3075_s27] sm:$0xff] }
 0x29e   : > { %v1600_v26 = vrot.slane %v1599_v59, 2  ;;  %v1648_v17 = vrot.slane %v1647_v7, 2  ;;  %v1825_v9 = vsel %vm1786_vm5, %v3619_v56, %v1824_v3  ;;  %v1712_v55 = vmul.f32 %v3710_v12, %v3710_v12  ;;  %v2761_v3 = vld [vmem:[%s3075_s27 + $0x20] sm:$0xff] }
 0x29f   : > { %v3734_v8 = vadd.f32 %v1596_v35, %v1595_v10  ;;  %v1644_v60 = vrot.slane %v1643_v24, 1  ;;  %v1826_v0 = vsel %vm1788_vm7, %v1697_v62, %v1825_v9  ;;  %v1704_v58 = vmul.f32 %v3680_v51, %v3680_v51 }
 0x2a0   : > { %v1601_v44 = vadd.f32 %v1600_v26, %v1599_v59  ;;  %v1649_v49 = vadd.f32 %v1648_v17, %v1647_v7  ;;  %v1827_v37 = vsel %vm1790_vm6, %v1698_v14, %v1826_v0  ;;  %v1705_v19 = vmul.f32 %v3722_v30, %v3722_v30  ;;  %v2759_v7 = vld [vmem:[%s3075_s27 + $0x10] sm:$0xff] }
 0x2a1   : > { %v3742_v22 = vadd.f32 %v1644_v60, %v1643_v24  ;;  %v1828_v56 = vsel %vm1792_vm8, %v1699_v36, %v1827_v37  ;;  %v1837_v10 = vsel %vm1782_vm3, %v3640_v4, %v3613_v18  ;;  %v1713_v62 = vmul.f32 %v3728_v31, %v3728_v31  ;;  %v2760_v24 = vld [vmem:[%s3075_s27 + $0x18] sm:$0xff] }
 0x2a2   : > { %v1602_v39 = vrot.slane %v1601_v44, 1  ;;  %v1650_v38 = vrot.slane %v1649_v49, 1  ;;  %1861 = vadd.xlane.f32.xlu0 %v1828_v56  ;;  %v1838_v15 = vsel %vm1784_vm4, %v1711_v1, %v1837_v10  ;;  %v1706_v61 = vmul.f32 %v3734_v8, %v3734_v8  ;;  %v2762_v56 = vld [vmem:[%s3066_s13] sm:$0xff] }
 0x2a3   : > { %v1830_v48 = vsel %vm1782_vm3, %v3587_v2, %v3544_v34  ;;  %v1714_v53 = vmul.f32 %v3742_v22, %v3742_v22  ;;  %v1839_v18 = vsel %vm1786_vm5, %v1712_v55, %v1838_v15  ;;  %v2384_v14 = vsel %vm603_vm1, %v2757_v32, 0.0 }
 0x2a4   : > { %v3759_v4 = vadd.f32 %v1602_v39, %v1601_v44  ;;  %v3761_v28 = vadd.f32 %v1650_v38, %v1649_v49  ;;  %v1831_v1 = vsel %vm1784_vm4, %v3678_v21, %v1830_v48  ;;  %v1840_v52 = vsel %vm1788_vm7, %v1713_v62, %v1839_v18 }
 0x2a5   : > { %v1832_v47 = vsel %vm1786_vm5, %v1704_v58, %v1831_v1  ;;  %v1841_v35 = vsel %vm1790_vm6, %v1714_v53, %v1840_v52  ;;  %v2381_v59 = vsel %vm603_vm1, %v2758_v16, 0.0  ;;  %v2387_v63 = vsel %vm603_vm1, %v2759_v7, 0.0  ;;  %v4111_v16 = vld [vmem:[#allocation28_spill] sm:$0xff]  ;;  %v4112_v7 = vld [vmem:[#allocation35_spill] sm:$0xff] }
 0x2a6   : > { %v1707_v57 = vmul.f32 %v3759_v4, %v3759_v4  ;;  %v1833_v34 = vsel %vm1788_vm7, %v1705_v19, %v1832_v47  ;;  %v1715_v2 = vmul.f32 %v3761_v28, %v3761_v28  ;;  %v2390_v36 = vsel %vm603_vm1, %v2760_v24, 0.0 }
 0x2a7   : > { %v1834_v20 = vsel %vm1790_vm6, %v1706_v61, %v1833_v34  ;;  %v2393_v26 = vsel %vm603_vm1, %v2761_v3, 0.0  ;;  %v2823_v0 = vmov 1966171168  }
 0x2a8   : > { %v1835_v21 = vsel %vm1792_vm8, %v1707_v57, %v1834_v20  ;;  %v1842_v13 = vsel %vm1792_vm8, %v1715_v2, %v1841_v35  ;;  %v2078_v58 = vunpack.c.l.s4 %v2823_v0 }
 0x2a9   : > { %1863 = vadd.xlane.f32.xlu1 %v1835_v21  ;;  %1865 = vadd.xlane.f32.xlu0 %v1842_v13  ;;  %v4110_v21 = vld [vmem:[#allocation7_spill] sm:$0xff] }
 0x2aa   : > { %v2079_v44 = vunpack.c.0.s8 %v2078_v58 }
 0x2ac   : > { %v3790_v62 = vsub.s32 %v2079_v44, %v3113_v5 }
 0x2ad   : > { %2385 = vadd.xlane.f32.xlu1 %v2384_v14  ;;  %2382 = vadd.xlane.f32.xlu0 %v2381_v59 }
 0x2b1   : > { %2388 = vadd.xlane.f32.xlu1 %v2387_v63 }
 0x2b5   : > { %2391 = vadd.xlane.f32.xlu1 %v2390_v36  ;;  %v4113_v36 = vld [vmem:[#allocation6_spill] sm:$0xff] }
 0x2b9   : > { %2394 = vadd.xlane.f32.xlu1 %v2393_v26 }
 0x2c3   : > { %v599_v17 = vpop.xlane.xlu0 %598 }
 0x2c4   : > { %v600_v9 = vmax.f32 %v599_v17, 1e-24 }
 0x2c6   : > { %2739 = vrsqrt.f32 %v600_v9 }
 0x2d0   : > { %v2740_v49 = vpop.eup %2739 }
 0x2d1   : > { %v3787_v10 = vmul.f32 %v2762_v56, %v2740_v49 }
 0x2d3   : > { %v2083_v38 = vrot.slane %v3787_v10, %v3790_v62 }
 0x2d5   : > { %v3800_v35 = vrot.slane %v2083_v38, %v3790_v62  ;;  %v2091_v24 = vcombine.high %v2083_v38, %v2083_v38 }
 0x2fb   : > { %v1852_v55 = vpop.xlane.xlu0 %1851 }
 0x2fc   : > { %v1867_v60 = vmax.f32 %v1852_v55, 1e-24 }
 0x2fe   : > { %2741 = vrsqrt.f32 %v1867_v60 }
 0x303   : > { %v1854_v37 = vpop.xlane.xlu1 %1853 }
 0x304   : > { %v1868_v19 = vmax.f32 %v1854_v37, 1e-24 }
 0x306   : > { %2743 = vrsqrt.f32 %v1868_v19 }
 0x308   : > { %v2742_v39 = vpop.eup %2741 }
 0x309   : > { %v1891_v15 = vrot.slane %v2742_v39, 1  ;;  %v1892_v61 = vrot.slane %v2742_v39, 2  ;;  %v1893_v48 = vrot.slane %v2742_v39, 3  ;;  %v1894_v53 = vrot.slane %v2742_v39, 4 }
 0x30a   : > { %v1895_v18 = vrot.slane %v2742_v39, 5  ;;  %v1896_v1 = vrot.slane %v2742_v39, 6  ;;  %v1897_v47 = vrot.slane %v2742_v39, 7  ;;  %v2011_v13 = vmul.f32 %v2742_v39, %v4110_v21  ;;  %v4114_v39 = vld [vmem:[#allocation8_spill] sm:$0xff]  ;;  %v4119_v21 = vld [vmem:[#allocation22_spill] sm:$0xff] }
 0x30b   : > { %v2012_v57 = vmul.f32 %v1891_v15, %v3298_v27  ;;  %v2013_v34 = vmul.f32 %v1892_v61, %v3315_v6  ;;  %v2014_v2 = vmul.f32 %v1893_v48, %v3348_v54  ;;  %v2015_v52 = vmul.f32 %v1894_v53, %v3396_v43  ;;  %v4115_v48 = vld [vmem:[#allocation11_spill] sm:$0xff] }
 0x30c   : > { %v2016_v20 = vmul.f32 %v1895_v18, %v3418_v42  ;;  %v2017_v59 = vmul.f32 %v1896_v1, %v4111_v16  ;;  %v2018_v63 = vmul.f32 %v1897_v47, %v4112_v7  ;;  %v2128_v43 = vrot.slane %v3800_v35, %v4113_v36  ;;  %v4116_v18 = vld [vmem:[#allocation14_spill] sm:$0xff] }
 0x30d   : > { %v2229_v32 = vrot.slane %v2012_v57, 7  ;;  %v2231_v14 = vrot.slane %v2013_v34, 6  ;;  %v2233_v6 = vrot.slane %v2014_v2, 5  ;;  %v2235_v3 = vrot.slane %v2015_v52, 4  ;;  %v4117_v57 = vld [vmem:[#allocation9_spill] sm:$0xff] }
 0x30e   : > { %v2237_v26 = vrot.slane %v2016_v20, 3  ;;  %v2239_v58 = vrot.slane %v2017_v59, 2  ;;  %v2241_v19 = vrot.slane %v2018_v63, 1  ;;  %v4118_v2 = vld [vmem:[#allocation17_spill] sm:$0xff]  ;;  %v4120_v59 = vld [vmem:[#allocation30_spill] sm:$0xff]  ;;  %v3822_v63 = vrot.slane %v2091_v24, %v3790_v62 }
 0x30f   : > { %v2230_v27 = vsel %vm1780_vm2, %v2229_v32, %v2011_v13 }
 0x310   : > { %v2744_v54 = vpop.eup %2743  ;;  %v2232_v42 = vsel %vm1782_vm3, %v2231_v14, %v2230_v27 }
 0x311   : > { %v2234_v17 = vsel %vm1784_vm4, %v2233_v6, %v2232_v42  ;;  %v1898_v9 = vrot.slane %v2744_v54, 1  ;;  %v1899_v55 = vrot.slane %v2744_v54, 2  ;;  %v1900_v60 = vrot.slane %v2744_v54, 3  ;;  %v4121_v6 = vld [vmem:[#allocation38_spill] sm:$0xff] }
 0x312   : > { %v2236_v0 = vsel %vm1786_vm5, %v2235_v3, %v2234_v17  ;;  %v1901_v44 = vrot.slane %v2744_v54, 4  ;;  %v1902_v49 = vrot.slane %v2744_v54, 5  ;;  %v1903_v56 = vrot.slane %v2744_v54, 6 }
 0x313   : > { %v2238_v37 = vsel %vm1788_vm7, %v2237_v26, %v2236_v0  ;;  %v2020_v38 = vmul.f32 %v1898_v9, %v4114_v39  ;;  %v1904_v61 = vrot.slane %v2744_v54, 7  ;;  %v2021_v53 = vmul.f32 %v1899_v55, %v4115_v48 }
 0x314   : > { %v2240_v15 = vsel %vm1790_vm6, %v2239_v58, %v2238_v37  ;;  %v2022_v1 = vmul.f32 %v1900_v60, %v4116_v18  ;;  %v2019_v34 = vmul.f32 %v2744_v54, %v4117_v57  ;;  %v2023_v52 = vmul.f32 %v1901_v44, %v4118_v2 }
 0x315   : > { %v2242_v47 = vsel %vm1792_vm8, %v2241_v19, %v2240_v15  ;;  %v2024_v13 = vmul.f32 %v1902_v49, %v4119_v21  ;;  %v2243_v32 = vrot.slane %v2020_v38, 7  ;;  %v2245_v14 = vrot.slane %v2021_v53, 6  ;;  %v4124_v21 = vld [vmem:[#allocation21_spill] sm:$0xff] }
 0x316   : > { %v2349_v20 = vmul.f32 %v2242_v47, %v2128_v43  ;;  %v2025_v7 = vmul.f32 %v1903_v56, %v4120_v59  ;;  %v2026_v42 = vmul.f32 %v1904_v61, %v4121_v6  ;;  %v2247_v54 = vrot.slane %v2022_v1, 5  ;;  %v4127_v59 = vld [vmem:[#allocation29_spill] sm:$0xff] }
 0x317   : > { %v1856_v16 = vpop.xlane.xlu0 %1855  ;;  %v2244_v3 = vsel %vm1780_vm2, %v2243_v32, %v2019_v34  ;;  %v2249_v43 = vrot.slane %v2023_v52, 4  ;;  %v2251_v9 = vrot.slane %v2024_v13, 3  ;;  %v2132_v55 = vrot.slane %v3822_v63, %v4113_v36  ;;  %v4122_v34 = vld [vmem:[#allocation12_spill] sm:$0xff]  ;;  %v4123_v52 = vld [vmem:[#allocation13_spill] sm:$0xff] }
 0x318   : > { %v1869_v27 = vmax.f32 %v1856_v16, 1e-24  ;;  %2357 = vadd.xlane.f32.xlu1 %v2349_v20  ;;  %v2246_v26 = vsel %vm1782_vm3, %v2245_v14, %v2244_v3  ;;  %v2253_v60 = vrot.slane %v2025_v7, 2  ;;  %v2255_v58 = vrot.slane %v2026_v42, 1  ;;  %v4126_v14 = vld [vmem:[#allocation10_spill] sm:$0xff] }
 0x319   : > { %v2248_v17 = vsel %vm1784_vm4, %v2247_v54, %v2246_v26  ;;  %v2076_v19 = vcombine.high %v3787_v10, %v3787_v10  ;;  %v4125_v10 = vld [vmem:[#allocation24_spill] sm:$0xff]  ;;  %v2121_v42 = vcombine.high %v3800_v35, %v3800_v35 }
 0x31a   : > { %2745 = vrsqrt.f32 %v1869_v27  ;;  %v2250_v24 = vsel %vm1786_vm5, %v2249_v43, %v2248_v17  ;;  %v4128_v17 = vld [vmem:[#allocation46_spill] sm:$0xff] }
 0x31b   : > { %v2252_v0 = vsel %vm1788_vm7, %v2251_v9, %v2250_v24  ;;  %v2090_v47 = vrot.slane %v2076_v19, %v3790_v62 }
 0x31c   : > { %v2254_v44 = vsel %vm1790_vm6, %v2253_v60, %v2252_v0 }
 0x31d   : > { %v2256_v49 = vsel %vm1792_vm8, %v2255_v58, %v2254_v44  ;;  %v2092_v26 = vcombine.high %v2090_v47, %v2090_v47  ;;  %v3850_v58 = vrot.slane %v2090_v47, %v3790_v62 }
 0x31e   : > { %v2350_v37 = vmul.f32 %v2256_v49, %v2132_v55  ;;  %v2763_v49 = vld [vmem:[%s3075_s27 + $0x28] sm:$0xff] }
 0x320   : > { %2359 = vadd.xlane.f32.xlu0 %v2350_v37  ;;  %v2136_v37 = vrot.slane %v2121_v42, %v4113_v36  ;;  %v4131_v42 = vld [vmem:[#allocation23_spill] sm:$0xff] }
 0x323   : > { %v1858_v56 = vpop.xlane.xlu0 %1857 }
 0x324   : > { %v2746_v39 = vpop.eup %2745  ;;  %v1870_v38 = vmax.f32 %v1858_v56, 1e-24 }
 0x325   : > { %v1905_v15 = vrot.slane %v2746_v39, 1  ;;  %v1906_v61 = vrot.slane %v2746_v39, 2  ;;  %v1907_v48 = vrot.slane %v2746_v39, 3  ;;  %v1908_v53 = vrot.slane %v2746_v39, 4 }
 0x326   : > { %2747 = vrsqrt.f32 %v1870_v38  ;;  %v1909_v18 = vrot.slane %v2746_v39, 5  ;;  %v1910_v1 = vrot.slane %v2746_v39, 6  ;;  %v1911_v57 = vrot.slane %v2746_v39, 7 }
 0x327   : > { %v2028_v2 = vmul.f32 %v1905_v15, %v4122_v34  ;;  %v2029_v20 = vmul.f32 %v1906_v61, %v4123_v52  ;;  %v2030_v13 = vmul.f32 %v1907_v48, %v4124_v21  ;;  %v2031_v32 = vmul.f32 %v1908_v53, %v4125_v10  ;;  %v2764_v48 = vld [vmem:[%s3075_s27 + $0x30] sm:$0xff] }
 0x328   : > { %v2027_v16 = vmul.f32 %v2746_v39, %v4126_v14  ;;  %v2032_v7 = vmul.f32 %v1909_v18, %v4127_v59  ;;  %v2033_v54 = vmul.f32 %v1910_v1, %v3533_v25  ;;  %v2034_v9 = vmul.f32 %v1911_v57, %v4128_v17  ;;  %v4129_v59 = vld [vmem:[#allocation16_spill] sm:$0xff] }
 0x329   : > { %v2257_v27 = vrot.slane %v2028_v2, 7  ;;  %v2259_v6 = vrot.slane %v2029_v20, 6  ;;  %v2261_v24 = vrot.slane %v2030_v13, 5  ;;  %v2263_v0 = vrot.slane %v2031_v32, 4 }
 0x32a   : > { %v1860_v3 = vpop.xlane.xlu1 %1859  ;;  %v2265_v44 = vrot.slane %v2032_v7, 3  ;;  %v2396_v25 = vsel %vm603_vm1, %v2763_v49, 0.0  ;;  %v2267_v56 = vrot.slane %v2033_v54, 2  ;;  %v2123_v39 = vcombine.high %v3822_v63, %v3822_v63  ;;  %v4132_v54 = vld [vmem:[#allocation32_spill] sm:$0xff] }
 0x32b   : > { %v1871_v43 = vmax.f32 %v1860_v3, 1e-24  ;;  %v2258_v55 = vsel %vm1780_vm2, %v2257_v27, %v2027_v16  ;;  %v2269_v61 = vrot.slane %v2034_v9, 1  ;;  %v2399_v53 = vsel %vm603_vm1, %v2764_v48, 0.0  ;;  %v4130_v27 = vld [vmem:[#allocation19_spill] sm:$0xff] }
 0x32c   : > { %v2260_v60 = vsel %vm1782_vm3, %v2259_v6, %v2258_v55  ;;  %v3863_v18 = vrot.slane %v2092_v26, %v3790_v62  ;;  %v2122_v34 = vcombine.high %v3850_v58, %v3850_v58  ;;  %v2144_v63 = vrot.slane %v3850_v58, %v4113_v36  ;;  %v4134_v9 = vld [vmem:[#allocation15_spill] sm:$0xff] }
 0x32d   : > { %2749 = vrsqrt.f32 %v1871_v43  ;;  %v2262_v35 = vsel %vm1784_vm4, %v2261_v24, %v2260_v60  ;;  %v2140_v62 = vrot.slane %v2123_v39, %v4113_v36  ;;  %v4133_v43 = vld [vmem:[#allocation39_spill] sm:$0xff] }
 0x32e   : > { %v2264_v19 = vsel %vm1786_vm5, %v2263_v0, %v2262_v35 }
 0x32f   : > { %v1862_v38 = vpop.xlane.xlu0 %1861  ;;  %v2266_v15 = vsel %vm1788_vm7, %v2265_v44, %v2264_v19 }
 0x330   : > { %v2748_v1 = vpop.eup %2747  ;;  %v1872_v47 = vmax.f32 %v1862_v38, 1e-24  ;;  %v2268_v57 = vsel %vm1790_vm6, %v2267_v56, %v2266_v15  ;;  %v2148_v56 = vrot.slane %v3863_v18, %v4113_v36 }
 0x331   : > { %v2270_v2 = vsel %vm1792_vm8, %v2269_v61, %v2268_v57  ;;  %v1912_v52 = vrot.slane %v2748_v1, 1  ;;  %v1913_v20 = vrot.slane %v2748_v1, 2  ;;  %v1914_v21 = vrot.slane %v2748_v1, 3 }
 0x332   : > { %v2351_v13 = vmul.f32 %v2270_v2, %v2136_v37  ;;  %v1915_v10 = vrot.slane %v2748_v1, 4  ;;  %v1916_v32 = vrot.slane %v2748_v1, 5  ;;  %2751 = vrsqrt.f32 %v1872_v47 }
 0x333   : > { %v1917_v14 = vrot.slane %v2748_v1, 6  ;;  %v1918_v16 = vrot.slane %v2748_v1, 7  ;;  %v2036_v7 = vmul.f32 %v1912_v52, %v4129_v59  ;;  %v2037_v6 = vmul.f32 %v1913_v20, %v4130_v27 }
 0x334   : > { %2361 = vadd.xlane.f32.xlu1 %v2351_v13  ;;  %v2038_v3 = vmul.f32 %v1914_v21, %v4131_v42  ;;  %v2039_v26 = vmul.f32 %v1915_v10, %v4132_v54  ;;  %v2040_v17 = vmul.f32 %v1916_v32, %v4133_v43  ;;  %v2035_v55 = vmul.f32 %v2748_v1, %v4134_v9 }
 0x335   : > { %v2041_v24 = vmul.f32 %v1917_v14, %v3615_v40  ;;  %v2042_v60 = vmul.f32 %v1918_v16, %v3655_v41  ;;  %v2271_v0 = vrot.slane %v2036_v7, 7  ;;  %v2273_v49 = vrot.slane %v2037_v6, 6  ;;  %v4135_v16 = vld [vmem:[#allocation20_spill] sm:$0xff]  ;;  %v4136_v7 = vld [vmem:[#allocation27_spill] sm:$0xff] }
 0x336   : > { %v1864_v35 = vpop.xlane.xlu1 %1863  ;;  %v1866_v44 = vpop.xlane.xlu0 %1865  ;;  %v2275_v37 = vrot.slane %v2038_v3, 5  ;;  %v2277_v19 = vrot.slane %v2039_v26, 4  ;;  %v2279_v48 = vrot.slane %v2040_v17, 3  ;;  %v4137_v6 = vld [vmem:[#allocation31_spill] sm:$0xff]  ;;  %v4138_v3 = vld [vmem:[#allocation37_spill] sm:$0xff]  ;;  %v4139_v17 = vld [vmem:[#allocation18_spill] sm:$0xff] }
 0x337   : > { %v2750_v39 = vpop.eup %2749  ;;  %v1873_v38 = vmax.f32 %v1864_v35, 1e-24  ;;  %v1874_v15 = vmax.f32 %v1866_v44, 1e-24  ;;  %v2272_v61 = vsel %vm1780_vm2, %v2271_v0, %v2035_v55  ;;  %v2281_v40 = vrot.slane %v2041_v24, 2  ;;  %v4140_v55 = vld [vmem:[#allocation45_spill] sm:$0xff] }
 0x338   : > { %v2274_v1 = vsel %vm1782_vm3, %v2273_v49, %v2272_v61  ;;  %2397 = vadd.xlane.f32.xlu1 %v2396_v25  ;;  %v1919_v41 = vrot.slane %v2750_v39, 1  ;;  %v1920_v47 = vrot.slane %v2750_v39, 2  ;;  %v2283_v2 = vrot.slane %v2042_v60, 1 }
 0x339   : > { %v2276_v57 = vsel %vm1784_vm4, %v2275_v37, %v2274_v1  ;;  %v1921_v52 = vrot.slane %v2750_v39, 3  ;;  %v1922_v20 = vrot.slane %v2750_v39, 4  ;;  %2753 = vrsqrt.f32 %v1873_v38 }
 0x33a   : > { %v2278_v21 = vsel %vm1786_vm5, %v2277_v19, %v2276_v57  ;;  %v1923_v13 = vrot.slane %v2750_v39, 5  ;;  %v1924_v10 = vrot.slane %v2750_v39, 6  ;;  %2755 = vrsqrt.f32 %v1874_v15  ;;  %v4141_v57 = vld [vmem:[#allocation25_spill] sm:$0xff] }
 0x33b   : > { %v2280_v32 = vsel %vm1788_vm7, %v2279_v48, %v2278_v21  ;;  %v1925_v14 = vrot.slane %v2750_v39, 7  ;;  %v2044_v59 = vmul.f32 %v1919_v41, %v4135_v16  ;;  %v2045_v27 = vmul.f32 %v1920_v47, %v4136_v7 }
 0x33c   : > { %v2282_v25 = vsel %vm1790_vm6, %v2281_v40, %v2280_v32  ;;  %v2046_v42 = vmul.f32 %v1921_v52, %v4137_v6  ;;  %v2047_v54 = vmul.f32 %v1922_v20, %v4138_v3  ;;  %2400 = vadd.xlane.f32.xlu1 %v2399_v53  ;;  %v2752_v26 = vpop.eup %2751  ;;  %v2043_v9 = vmul.f32 %v2750_v39, %v4139_v17  ;;  %v4142_v20 = vld [vmem:[#allocation36_spill] sm:$0xff] }
 0x33d   : > { %v2284_v43 = vsel %vm1792_vm8, %v2283_v2, %v2282_v25  ;;  %v2048_v24 = vmul.f32 %v1923_v13, %v4140_v55  ;;  %v2049_v60 = vmul.f32 %v1924_v10, %v3653_v33  ;;  %v2050_v35 = vmul.f32 %v1925_v14, %v3686_v11  ;;  %v4143_v13 = vld [vmem:[#allocation41_spill] sm:$0xff]  ;;  %v4144_v32 = vld [vmem:[#allocation44_spill] sm:$0xff]  ;;  %v4145_v25 = vld [vmem:[#allocation26_spill] sm:$0xff] }
 0x33e   : > { %v2352_v0 = vmul.f32 %v2284_v43, %v2140_v62  ;;  %v2285_v44 = vrot.slane %v2044_v59, 7  ;;  %v2287_v49 = vrot.slane %v2045_v27, 6  ;;  %v2289_v37 = vrot.slane %v2046_v42, 5 }
 0x33f   : > { %v2291_v19 = vrot.slane %v2047_v54, 4  ;;  %v2293_v38 = vrot.slane %v2048_v24, 3  ;;  %v2295_v15 = vrot.slane %v2049_v60, 2  ;;  %v1926_v61 = vrot.slane %v2752_v26, 1 }
 0x340   : > { %2363 = vadd.xlane.f32.xlu0 %v2352_v0  ;;  %v2286_v53 = vsel %vm1780_vm2, %v2285_v44, %v2043_v9  ;;  %v1927_v48 = vrot.slane %v2752_v26, 2  ;;  %v1928_v1 = vrot.slane %v2752_v26, 3  ;;  %v1929_v40 = vrot.slane %v2752_v26, 4 }
 0x341   : > { %v2288_v39 = vsel %vm1782_vm3, %v2287_v49, %v2286_v53  ;;  %v1930_v41 = vrot.slane %v2752_v26, 5  ;;  %v1931_v33 = vrot.slane %v2752_v26, 6  ;;  %v2297_v11 = vrot.slane %v2050_v35, 1 }
 0x342   : > { %v2290_v62 = vsel %vm1784_vm4, %v2289_v37, %v2288_v39  ;;  %v1932_v47 = vrot.slane %v2752_v26, 7  ;;  %v2052_v2 = vmul.f32 %v1926_v61, %v4141_v57  ;;  %v2053_v21 = vmul.f32 %v1927_v48, %v4142_v20  ;;  %v4146_v48 = vld [vmem:[#allocation34_spill] sm:$0xff] }
 0x343   : > { %v2292_v52 = vsel %vm1786_vm5, %v2291_v19, %v2290_v62  ;;  %v2054_v10 = vmul.f32 %v1928_v1, %v4143_v13  ;;  %v2055_v14 = vmul.f32 %v1929_v40, %v4144_v32  ;;  %v2754_v16 = vpop.eup %2753  ;;  %v2051_v7 = vmul.f32 %v2752_v26, %v4145_v25  ;;  %v4147_v1 = vld [vmem:[#allocation40_spill] sm:$0xff] }
 0x344   : > { %v2294_v59 = vsel %vm1788_vm7, %v2293_v38, %v2292_v52  ;;  %v2056_v27 = vmul.f32 %v1930_v41, %v3658_v46  ;;  %v2057_v6 = vmul.f32 %v1931_v33, %v3695_v45  ;;  %v3909_v42 = vpop.eup %2755  ;;  %v2058_v54 = vmul.f32 %v1932_v47, %v3706_v23  ;;  %v4148_v47 = vld [vmem:[#allocation33_spill] sm:$0xff] }
 0x345   : > { %v2296_v3 = vsel %vm1790_vm6, %v2295_v15, %v2294_v59  ;;  %v2299_v43 = vrot.slane %v2052_v2, 7  ;;  %v2301_v17 = vrot.slane %v2053_v21, 6  ;;  %v2303_v55 = vrot.slane %v2054_v10, 5 }
 0x346   : > { %v2298_v9 = vsel %vm1792_vm8, %v2297_v11, %v2296_v3  ;;  %v2305_v24 = vrot.slane %v2055_v14, 4  ;;  %v2307_v60 = vrot.slane %v2056_v27, 3  ;;  %v2309_v45 = vrot.slane %v2057_v6, 2 }
 0x347   : > { %v2353_v26 = vmul.f32 %v2298_v9, %v2144_v63  ;;  %v2300_v46 = vsel %vm1780_vm2, %v2299_v43, %v2051_v7  ;;  %v1933_v0 = vrot.slane %v2754_v16, 1  ;;  %v1934_v44 = vrot.slane %v2754_v16, 2 }
 0x348   : > { %v2302_v35 = vsel %vm1782_vm3, %v2301_v17, %v2300_v46  ;;  %v1935_v49 = vrot.slane %v2754_v16, 3  ;;  %v1936_v23 = vrot.slane %v2754_v16, 4  ;;  %v1937_v19 = vrot.slane %v2754_v16, 5  ;;  %v4149_v17 = vld [vmem:[#allocation43_spill] sm:$0xff] }
 0x349   : > { %2365 = vadd.xlane.f32.xlu0 %v2353_v26  ;;  %v2304_v37 = vsel %vm1784_vm4, %v2303_v55, %v2302_v35  ;;  %v1938_v38 = vrot.slane %v2754_v16, 6  ;;  %v1939_v15 = vrot.slane %v2754_v16, 7  ;;  %v2311_v61 = vrot.slane %v2058_v54, 1  ;;  %v4150_v55 = vld [vmem:[#allocation47_spill] sm:$0xff] }
 0x34a   : > { %v2306_v53 = vsel %vm1786_vm5, %v2305_v24, %v2304_v37  ;;  %v2060_v63 = vmul.f32 %v1933_v0, %v4146_v48  ;;  %v2061_v39 = vmul.f32 %v1934_v44, %v4147_v1  ;;  %v2062_v41 = vmul.f32 %v1935_v49, %v3644_v50 }
 0x34b   : > { %v2308_v40 = vsel %vm1788_vm7, %v2307_v60, %v2306_v53  ;;  %v2063_v33 = vmul.f32 %v1936_v23, %v3680_v51  ;;  %v2064_v62 = vmul.f32 %v1937_v19, %v3722_v30  ;;  %v2059_v57 = vmul.f32 %v2754_v16, %v4148_v47 }
 0x34c   : > { %v2310_v11 = vsel %vm1790_vm6, %v2309_v45, %v2308_v40  ;;  %v2065_v2 = vmul.f32 %v1938_v38, %v3734_v8  ;;  %v2313_v52 = vrot.slane %v2060_v63, 7  ;;  %v2066_v21 = vmul.f32 %v1939_v15, %v3759_v4  ;;  %v4151_v45 = vld [vmem:[#allocation42_spill] sm:$0xff] }
 0x34d   : > { %v2312_v20 = vsel %vm1792_vm8, %v2311_v61, %v2310_v11  ;;  %v2315_v13 = vrot.slane %v2061_v39, 6  ;;  %v2317_v10 = vrot.slane %v2062_v41, 5  ;;  %v2319_v30 = vrot.slane %v2063_v33, 4  ;;  %v2386_v33 = vpop.xlane.xlu1 %2385  ;;  %v2383_v11 = vpop.xlane.xlu0 %2382 }
 0x34e   : > { %v2354_v50 = vmul.f32 %v2312_v20, %v2148_v56  ;;  %v2314_v51 = vsel %vm1780_vm2, %v2313_v52, %v2059_v57  ;;  %v2321_v32 = vrot.slane %v2064_v62, 3  ;;  %v2323_v16 = vrot.slane %v2065_v2, 2 }
 0x34f   : > { %v2316_v14 = vsel %vm1782_vm3, %v2315_v13, %v2314_v51  ;;  %v1940_v8 = vrot.slane %v3909_v42, 1  ;;  %v1941_v59 = vrot.slane %v3909_v42, 2  ;;  %v1942_v25 = vrot.slane %v3909_v42, 3 }
 0x350   : > { %2367 = vadd.xlane.f32.xlu0 %v2354_v50  ;;  %v2318_v4 = vsel %vm1784_vm4, %v2317_v10, %v2316_v14  ;;  %v1943_v7 = vrot.slane %v3909_v42, 4  ;;  %v1944_v56 = vrot.slane %v3909_v42, 5  ;;  %v2325_v6 = vrot.slane %v2066_v21, 1 }
 0x351   : > { %v2320_v27 = vsel %vm1786_vm5, %v2319_v30, %v2318_v4  ;;  %v1945_v3 = vrot.slane %v3909_v42, 6  ;;  %v1946_v54 = vrot.slane %v3909_v42, 7  ;;  %v2068_v9 = vmul.f32 %v1940_v8, %v4149_v17  ;;  %v2389_v62 = vpop.xlane.xlu1 %2388 }
 0x352   : > { %v2322_v43 = vsel %vm1788_vm7, %v2321_v32, %v2320_v27  ;;  %v2069_v24 = vmul.f32 %v1941_v59, %v4150_v55  ;;  %v2070_v60 = vmul.f32 %v1942_v25, %v3669_v29  ;;  %v2152_v26 = vrot.slane %v2122_v34, %v4113_v36 }
 0x353   : > { %v2324_v46 = vsel %vm1790_vm6, %v2323_v16, %v2322_v43  ;;  %v2067_v0 = vmul.f32 %v3909_v42, %v4151_v45  ;;  %v2071_v35 = vmul.f32 %v1943_v7, %v3710_v12  ;;  %v2072_v49 = vmul.f32 %v1944_v56, %v3728_v31 }
 0x354   : > { %v2326_v44 = vsel %vm1792_vm8, %v2325_v6, %v2324_v46  ;;  %v2327_v23 = vrot.slane %v2068_v9, 7  ;;  %v2329_v37 = vrot.slane %v2069_v24, 6  ;;  %v2073_v29 = vmul.f32 %v1945_v3, %v3742_v22 }
 0x355   : > { %v2355_v19 = vmul.f32 %v2326_v44, %v2152_v26  ;;  %v2074_v38 = vmul.f32 %v1946_v54, %v3761_v28  ;;  %v2331_v34 = vrot.slane %v2070_v60, 5  ;;  %v2124_v42 = vcombine.high %v3863_v18, %v3863_v18  ;;  %v2765_v18 = vld [vmem:[%s3075_s27 + $0x38] sm:$0xff]  ;;  %v2392_v47 = vpop.xlane.xlu1 %2391 }
 0x356   : > { %v2328_v58 = vsel %vm1780_vm2, %v2327_v23, %v2067_v0  ;;  %v2333_v15 = vrot.slane %v2071_v35, 4  ;;  %v2335_v53 = vrot.slane %v2072_v49, 3  ;;  %v2337_v48 = vrot.slane %v2073_v29, 2 }
 0x357   : > { %2369 = vadd.xlane.f32.xlu0 %v2355_v19  ;;  %v2330_v12 = vsel %vm1782_vm3, %v2329_v37, %v2328_v58  ;;  %v2339_v28 = vrot.slane %v2074_v38, 1  ;;  %v2156_v63 = vrot.slane %v2124_v42, %v4113_v36  ;;  %v2402_v41 = vsel %vm603_vm1, %v2765_v18, 0.0 }
 0x358   : > { %v2332_v31 = vsel %vm1784_vm4, %v2331_v34, %v2330_v12  ;;  %v4152_v20 = vlaneseq  ;;  %v2408_v9 = vstv %s2644_s20  ;;  %v2411_v38 = vstv %s3978_s17 }
 0x359   : > { %v2334_v61 = vsel %vm1786_vm5, %v2333_v15, %v2332_v31  ;;  %v2395_v2 = vpop.xlane.xlu1 %2394 }
 0x35a   : > { %v2336_v22 = vsel %vm1788_vm7, %v2335_v53, %v2334_v61  ;;  %v2407_v21 = vand.u32 127, %v4152_v20 }
 0x35b   : > { %v2338_v1 = vsel %vm1790_vm6, %v2337_v48, %v2336_v22 }
 0x35c   : > { %v2340_v39 = vsel %vm1792_vm8, %v2339_v28, %v2338_v1  ;;  %v2425_v36 = vsub.s32 %v2407_v21, %v3113_v5  ;;  %v2409_v23 = vadd.s32 %v2408_v9, %v2407_v21 }
 0x35d   : > { %v2356_v40 = vmul.f32 %v2340_v39, %v2156_v63 }
 0x35e   : > { %v2430_v50 = vrot.slane %v2386_v33, %v2425_v36  ;;  %v2426_v51 = vrot.slane %v2383_v11, %v2425_v36  ;;  %v2434_v32 = vrot.slane %v2389_v62, %v2425_v36  ;;  %v2438_v8 = vrot.slane %v2392_v47, %v2425_v36 }
 0x35f   : > { %2371 = vadd.xlane.f32.xlu0 %v2356_v40  ;;  %v2442_v5 = vrot.slane %v2395_v2, %v2425_v36  ;;  %vm2412_vm9 = vcmp.lt.s32.totalorder %v2409_v23, %v2411_v38 }
 0x360   : > { %v2455_v16 = vsel %vm1780_vm2, %v2430_v50, %v2426_v51 }
 0x361   : > { %v2456_v4 = vsel %vm1782_vm3, %v2434_v32, %v2455_v16 }
 0x362   : > { %v2457_v3 = vsel %vm1784_vm4, %v2438_v8, %v2456_v4 }
 0x363   : > { %2403 = vadd.xlane.f32.xlu0 %v2402_v41  ;;  %v2458_v0 = vsel %vm1786_vm5, %v2442_v5, %v2457_v3  ;;  %v2464_v41 = vld [vmem:[%s3071_s16] sm:$0xff] }
 0x3a5   : > { %v2358_v13 = vpop.xlane.xlu1 %2357 }
 0x3a6   : > { %v2373_v27 = vsub.f32 1.0, %v2358_v13 }
 0x3a8   : > { %v2476_v46 = vrot.slane %v2373_v27, %v2425_v36 }
 0x3ad   : > { %v2360_v57 = vpop.xlane.xlu0 %2359 }
 0x3ae   : > { %v2374_v25 = vsub.f32 1.0, %v2360_v57 }
 0x3b0   : > { %v2480_v43 = vrot.slane %v2374_v25, %v2425_v36 }
 0x3b2   : > { %v2505_v37 = vsel %vm1780_vm2, %v2480_v43, %v2476_v46 }
 0x3c1   : > { %v2362_v30 = vpop.xlane.xlu1 %2361 }
 0x3c2   : > { %v2375_v56 = vsub.f32 1.0, %v2362_v30 }
 0x3c4   : > { %v2484_v55 = vrot.slane %v2375_v56, %v2425_v36 }
 0x3c5   : > { %v2398_v59 = vpop.xlane.xlu1 %2397 }
 0x3c6   : > { %v2446_v24 = vrot.slane %v2398_v59, %v2425_v36  ;;  %v2506_v58 = vsel %vm1782_vm3, %v2484_v55, %v2505_v37 }
 0x3c8   : > { %v2459_v34 = vsel %vm1788_vm7, %v2446_v24, %v2458_v0 }
 0x3c9   : > { %v2401_v60 = vpop.xlane.xlu1 %2400 }
 0x3ca   : > { %v2450_v19 = vrot.slane %v2401_v60, %v2425_v36 }
 0x3cc   : > { %v2460_v48 = vsel %vm1790_vm6, %v2450_v19, %v2459_v34 }
 0x3cd   : > { %v2364_v52 = vpop.xlane.xlu0 %2363 }
 0x3ce   : > { %v2376_v6 = vsub.f32 1.0, %v2364_v52 }
 0x3d0   : > { %v2488_v45 = vrot.slane %v2376_v6, %v2425_v36 }
 0x3d2   : > { %v2507_v12 = vsel %vm1784_vm4, %v2488_v45, %v2506_v58 }
 0x3d6   : > { %v2366_v10 = vpop.xlane.xlu0 %2365 }
 0x3d7   : > { %v2377_v54 = vsub.f32 1.0, %v2366_v10 }
 0x3d9   : > { %v2492_v44 = vrot.slane %v2377_v54, %v2425_v36 }
 0x3db   : > { %v2508_v53 = vsel %vm1786_vm5, %v2492_v44, %v2507_v12 }
 0x3dd   : > { %v2368_v14 = vpop.xlane.xlu0 %2367 }
 0x3de   : > { %v2378_v17 = vsub.f32 1.0, %v2368_v14 }
 0x3e0   : > { %v2496_v29 = vrot.slane %v2378_v17, %v2425_v36 }
 0x3e2   : > { %v2509_v22 = vsel %vm1788_vm7, %v2496_v29, %v2508_v53 }
 0x3e4   : > { %v2370_v7 = vpop.xlane.xlu0 %2369 }
 0x3e5   : > { %v2379_v26 = vsub.f32 1.0, %v2370_v7 }
 0x3e7   : > { %v2500_v42 = vrot.slane %v2379_v26, %v2425_v36 }
 0x3e9   : > { %v2510_v63 = vsel %vm1790_vm6, %v2500_v42, %v2509_v22 }
 0x3ec   : > { %v2372_v35 = vpop.xlane.xlu0 %2371 }
 0x3ed   : > { %v2380_v49 = vsub.f32 1.0, %v2372_v35 }
 0x3ef   : > { %v2504_v15 = vrot.slane %v2380_v49, %v2425_v36 }
 0x3f0   : > { %v2404_v31 = vpop.xlane.xlu0 %2403 }
 0x3f1   : > { %v2454_v61 = vrot.slane %v2404_v31, %v2425_v36  ;;  %v2511_v39 = vsel %vm1792_vm8, %v2504_v15, %v2510_v63 }
 0x3f3   : > { %v2461_v28 = vsel %vm1792_vm8, %v2454_v61, %v2460_v48 }
 0x3f4   : > { %v2463_v1 = vsel %vm2412_vm9, %v2461_v28, 0.0 }
 0x3f5   : > { %v2513_v40 = vmul.f32 %v2511_v39, %v2463_v1 }
 0x3f7   : > { %v2514_v18 = vsel %vm603_vm1, %v2513_v40, 0.0 }
 0x3f8   : > { %2515 = vadd.xlane.f32.xlu1 %v2514_v18 }
 0x485   : > { %v2516_v33 = vpop.xlane.xlu1 %2515 }
 0x486   : > { %v2517_v62 = vadd.f32 %v2516_v33, %v2464_v41 }
 0x488   : > { %2519 = vst.msk [vmem:[%s3071_s16] sm:$0xff] %vm2518_vm10, %v2517_v62 }
 0x489 PF: > { %s15_s23 = sadd.s32 1, %s2820_s23   ;;  %s4153_s17 = smov %s2800_s18 }
 0x48a   : > { %p12_p12 = scmp.ge.s32.totalorder %s15_s23, 10   ;;  %s4154_s18 = smov %s2907_s30 }
 0x48b   : > { %s4155_s19 = smov %s2812_s21  ;;  %s4156_s20 = smov %s2816_s22 }
 0x48c   : > { %s4157_s21 = smov %s4160_s0  ;;  %s4158_s22 = smov %s4164_s24 }
 0x48d   :  { %14 = sbr.rel (!%p12_p12) target bundleno = 6 (0x6), region = 158 }

</bundles_post_ra>
